<compile_context>
chip_gen: v6e
topology: v6e:2x2x1
jax: 0.10.0
libtpu: 0.0.40
codegen_flags: <defaults>
</compile_context>

<pallas_src>
import functools
import math

import jax
import jax.numpy as jnp
from jax.experimental import pallas as pl
from jax.experimental.pallas import tpu as pltpu

LN_EPS = 1e-5
BN_EPS = 1e-5
HP = jax.lax.Precision.HIGHEST


# --------------------------------------------------------------------------- #
# Pallas kernels
# --------------------------------------------------------------------------- #
def _ln_rows(x, g, b, eps):
    """LayerNorm over the last dim of a [rows, H] f32 block."""
    mu = jnp.mean(x, axis=-1, keepdims=True)
    xc = x - mu
    var = jnp.mean(xc * xc, axis=-1, keepdims=True)
    return xc * jax.lax.rsqrt(var + eps) * g + b


def _layernorm_kernel(x_ref, g_ref, b_ref, o_ref, *, eps):
    x = x_ref[...].astype(jnp.float32)
    o_ref[...] = _ln_rows(x, g_ref[...], b_ref[...], eps).astype(o_ref.dtype)


def _ffn_kernel(x_ref, g_ref, b_ref, w1_ref, b1_ref, w2_ref, b2_ref, o_ref, *, eps):
    # fused: LN -> dense1 -> swish -> dense2 -> 0.5*out + residual
    x = x_ref[...].astype(jnp.float32)
    ln = _ln_rows(x, g_ref[...], b_ref[...], eps)
    h = jnp.dot(ln, w1_ref[...], preferred_element_type=jnp.float32) + b1_ref[...]
    h = h * jax.nn.sigmoid(h)                                # swish / SiLU
    y = jnp.dot(h, w2_ref[...], preferred_element_type=jnp.float32) + b2_ref[...]
    o_ref[...] = (x + 0.5 * y).astype(o_ref.dtype)


def _attention_kernel(qu_ref, k_ref, v_ref, bd_ref, wo_ref, bo_ref, res_ref, o_ref,
                      *, num_heads, head_size):
    # qu/k/v: [nH, T, d]; bd: [nH, T, T]; wo: [nH, d, H]; bo: [1, H]; res/o: [T, H]
    scale = 1.0 / math.sqrt(head_size)
    T, H = res_ref.shape
    # bias folded into the f32 accumulator init; per-head output projection accumulated
    out = jnp.broadcast_to(bo_ref[...].astype(jnp.float32), (T, H))
    for h in range(num_heads):
        qh = qu_ref[h].astype(jnp.float32)                   # [T, d]
        kh = k_ref[h].astype(jnp.float32)
        vh = v_ref[h].astype(jnp.float32)
        # scores_ac = q_u . k^T  (contract head dim directly, no explicit transpose)
        ac = jax.lax.dot_general(qh, kh, (((1,), (1,)), ((), ())),
                                 preferred_element_type=jnp.float32)     # [T, T]
        s = (ac + bd_ref[h]) * scale
        m = jnp.max(s, axis=-1, keepdims=True)
        e = jnp.exp(s - m)
        p = e / jnp.sum(e, axis=-1, keepdims=True)
        ctx = jnp.dot(p, vh, preferred_element_type=jnp.float32)         # [T, d]
        out = out + jnp.dot(ctx, wo_ref[h], preferred_element_type=jnp.float32)
    o_ref[...] = (res_ref[...].astype(jnp.float32) + out).astype(o_ref.dtype)


def _conv_module_kernel(x_ref, g_ref, b_ref, w1a_ref, w1b_ref, shift_ref, dw_ref,
                        bns_ref, bnb_ref, w2_ref, o_ref, *, kernel_size, eps):
    # x/o: [T, H]; w1a/w1b/w2: [H, H]; shift: [K, T, T]; dw: [K, H]; affines: [1, H]
    x = x_ref[...].astype(jnp.float32)
    ln = _ln_rows(x, g_ref[...], b_ref[...], eps)
    a = jnp.dot(ln, w1a_ref[...], preferred_element_type=jnp.float32)
    gate = jnp.dot(ln, w1b_ref[...], preferred_element_type=jnp.float32)
    glu = a * jax.nn.sigmoid(gate)                           # GLU over the two halves
    # depthwise "same" conv: each tap is a small banded-shift matmul x per-channel scale
    acc = jnp.zeros_like(glu)
    for ktap in range(kernel_size):
        shifted = jnp.dot(shift_ref[ktap], glu, preferred_element_type=jnp.float32)
        acc = acc + shifted * dw_ref[ktap:ktap + 1, :]
    # batch-norm (inference affine) + swish
    y = acc * bns_ref[...] + bnb_ref[...]
    y = y * jax.nn.sigmoid(y)
    out = jnp.dot(y, w2_ref[...], preferred_element_type=jnp.float32)
    o_ref[...] = (x + out).astype(o_ref.dtype)


# --------------------------------------------------------------------------- #
# pallas_call wrappers
# --------------------------------------------------------------------------- #
def _row_tile(rows):
    for tile in (512, 256, 128, 64, 32, 16, 8):
        if rows % tile == 0:
            return min(tile, rows)
    return rows


def pallas_layer_norm(x, gamma, beta, eps=LN_EPS):
    B, T, H = x.shape
    R = B * T                                                # collapse batch into rows
    tr = _row_tile(R)
    out = pl.pallas_call(
        functools.partial(_layernorm_kernel, eps=eps),
        out_shape=jax.ShapeDtypeStruct((R, H), x.dtype),
        grid_spec=pltpu.PrefetchScalarGridSpec(
            num_scalar_prefetch=0,
            grid=(R // tr,),
            in_specs=[
                pl.BlockSpec((tr, H), lambda i: (i, 0)),
                pl.BlockSpec((1, H), lambda i: (0, 0)),
                pl.BlockSpec((1, H), lambda i: (0, 0)),
            ],
            out_specs=pl.BlockSpec((tr, H), lambda i: (i, 0)),
        ),
        compiler_params=pltpu.CompilerParams(dimension_semantics=("parallel",)),
    )(x.reshape(R, H), gamma.reshape(1, H), beta.reshape(1, H))
    return out.reshape(B, T, H)


def pallas_ffn(x, p):
    B, T, H = x.shape
    R = B * T                                                # collapse batch into rows
    inter = p["w1"].shape[1]
    tr = _row_tile(R)
    out = pl.pallas_call(
        functools.partial(_ffn_kernel, eps=LN_EPS),
        out_shape=jax.ShapeDtypeStruct((R, H), x.dtype),
        grid_spec=pltpu.PrefetchScalarGridSpec(
            num_scalar_prefetch=0,
            grid=(R // tr,),
            in_specs=[
                pl.BlockSpec((tr, H), lambda i: (i, 0)),
                pl.BlockSpec((1, H), lambda i: (0, 0)),
                pl.BlockSpec((1, H), lambda i: (0, 0)),
                pl.BlockSpec((H, inter), lambda i: (0, 0)),
                pl.BlockSpec((1, inter), lambda i: (0, 0)),
                pl.BlockSpec((inter, H), lambda i: (0, 0)),
                pl.BlockSpec((1, H), lambda i: (0, 0)),
            ],
            out_specs=pl.BlockSpec((tr, H), lambda i: (i, 0)),
        ),
        compiler_params=pltpu.CompilerParams(dimension_semantics=("parallel",)),
    )(x.reshape(R, H), p["ln_g"].reshape(1, H), p["ln_b"].reshape(1, H),
      p["w1"], p["b1"].reshape(1, inter), p["w2"], p["b2"].reshape(1, H))
    return out.reshape(B, T, H)


def pallas_attention_core(q_u, k_h, v_h, bd, wo_h, bo, residual, *, num_heads, head_size):
    B, T, H = residual.shape
    kernel = functools.partial(_attention_kernel, num_heads=num_heads,
                               head_size=head_size)
    return pl.pallas_call(
        kernel,
        out_shape=jax.ShapeDtypeStruct((B, T, H), residual.dtype),
        grid_spec=pltpu.PrefetchScalarGridSpec(
            num_scalar_prefetch=0,
            grid=(B,),
            in_specs=[
                pl.BlockSpec((pl.Squeezed(), num_heads, T, head_size), lambda b: (b, 0, 0, 0)),
                pl.BlockSpec((pl.Squeezed(), num_heads, T, head_size), lambda b: (b, 0, 0, 0)),
                pl.BlockSpec((pl.Squeezed(), num_heads, T, head_size), lambda b: (b, 0, 0, 0)),
                pl.BlockSpec((pl.Squeezed(), num_heads, T, T), lambda b: (b, 0, 0, 0)),
                pl.BlockSpec((num_heads, head_size, H), lambda b: (0, 0, 0)),
                pl.BlockSpec((1, H), lambda b: (0, 0)),
                pl.BlockSpec((pl.Squeezed(), T, H), lambda b: (b, 0, 0)),
            ],
            out_specs=pl.BlockSpec((pl.Squeezed(), T, H), lambda b: (b, 0, 0)),
        ),
        compiler_params=pltpu.CompilerParams(dimension_semantics=("parallel",)),
    )(q_u, k_h, v_h, bd, wo_h, bo.reshape(1, H), residual)


def pallas_conv_module(x, p, shift_mats):
    B, T, H = x.shape
    Kd = p["dw"].shape[0]
    bn_scale = p["bn_g"] * jax.lax.rsqrt(p["bn_var"] + BN_EPS)
    bn_shift = p["bn_b"] - p["bn_mean"] * bn_scale
    kernel = functools.partial(_conv_module_kernel, kernel_size=Kd, eps=LN_EPS)
    return pl.pallas_call(
        kernel,
        out_shape=jax.ShapeDtypeStruct((B, T, H), x.dtype),
        grid_spec=pltpu.PrefetchScalarGridSpec(
            num_scalar_prefetch=0,
            grid=(B,),
            in_specs=[
                pl.BlockSpec((pl.Squeezed(), T, H), lambda b: (b, 0, 0)),
                pl.BlockSpec((1, H), lambda b: (0, 0)),
                pl.BlockSpec((1, H), lambda b: (0, 0)),
                pl.BlockSpec((H, H), lambda b: (0, 0)),
                pl.BlockSpec((H, H), lambda b: (0, 0)),
                pl.BlockSpec((Kd, T, T), lambda b: (0, 0, 0)),
                pl.BlockSpec((Kd, H), lambda b: (0, 0)),
                pl.BlockSpec((1, H), lambda b: (0, 0)),
                pl.BlockSpec((1, H), lambda b: (0, 0)),
                pl.BlockSpec((H, H), lambda b: (0, 0)),
            ],
            out_specs=pl.BlockSpec((pl.Squeezed(), T, H), lambda b: (b, 0, 0)),
        ),
        compiler_params=pltpu.CompilerParams(dimension_semantics=("parallel",)),
    )(x, p["ln_g"].reshape(1, H), p["ln_b"].reshape(1, H), p["pw1_a"], p["pw1_b"],
      shift_mats, p["dw"], bn_scale.reshape(1, H), bn_shift.reshape(1, H), p["pw2"])


# --------------------------------------------------------------------------- #
# JAX glue (relative positional embedding, rel-shift, layer/encoder assembly)
# --------------------------------------------------------------------------- #
def relative_position_embeddings(T, H, dtype=jnp.float32):
    """Mirrors ConformerRelPositionalEmbedding for a length-T window."""
    pos = jnp.arange(T, dtype=jnp.float32)[:, None]
    div = jnp.exp(jnp.arange(0, H, 2, dtype=jnp.float32) * (-math.log(10000.0) / H))
    pe_pos = jnp.zeros((T, H), jnp.float32)
    pe_pos = pe_pos.at[:, 0::2].set(jnp.sin(pos * div))
    pe_pos = pe_pos.at[:, 1::2].set(jnp.cos(pos * div))
    pe_neg = jnp.zeros((T, H), jnp.float32)
    pe_neg = pe_neg.at[:, 0::2].set(jnp.sin(-pos * div))
    pe_neg = pe_neg.at[:, 1::2].set(jnp.cos(-pos * div))
    pe = jnp.concatenate([jnp.flip(pe_pos, axis=0), pe_neg[1:]], axis=0)
    return pe[None].astype(dtype)                            # [1, 2T-1, H]


def _rel_shift(scores_bd):
    """Mirrors the zero-pad / reshape trick in _apply_relative_embeddings."""
    B, nH, T, L = scores_bd.shape                            # L = 2T - 1
    zero_pad = jnp.zeros((B, nH, T, 1), scores_bd.dtype)
    padded = jnp.concatenate([zero_pad, scores_bd], axis=-1)
    padded = padded.reshape(B, nH, L + 1, T)
    shifted = padded[:, :, 1:].reshape(B, nH, T, L)
    return shifted[:, :, :, : L // 2 + 1]                    # [B, nH, T, T]


def make_shift_matrices(T, Kd):
    """shift_mats[k][i, s] = 1 iff s == i + k - pad  (banded depthwise-conv taps)."""
    pad = (Kd - 1) // 2
    t = jnp.arange(T)
    return jnp.stack(
        [(t[None, :] == (t[:, None] + k - pad)).astype(jnp.float32) for k in range(Kd)]
    )


def conformer_encoder_layer(x, p, rel_emb, shift_mats, num_heads):
    B, T, H = x.shape
    d = H // num_heads

    # ---- FFN1 (fused LN + dense/swish/dense + 0.5*residual) ----
    x = pallas_ffn(x, p["ffn1"])

    # ---- Self attention ----
    residual = x
    x_ln = pallas_layer_norm(x, p["attn_ln_g"], p["attn_ln_b"])
    q = jnp.dot(x_ln, p["wq"], precision=HP) + p["bq"]
    k = jnp.dot(x_ln, p["wk"], precision=HP) + p["bk"]
    v = jnp.dot(x_ln, p["wv"], precision=HP) + p["bv"]
    # Transformer-XL style relative-position "bd" scores, incl. the shift trick.
    pos = jnp.dot(rel_emb, p["w_pos"], precision=HP)                          # [1, 2T-1, H]
    pos = pos.reshape(1, 2 * T - 1, num_heads, d).transpose(0, 2, 3, 1)       # [1,nH,d,2T-1]
    q4 = q.reshape(B, T, num_heads, d)
    q_v = (q4 + p["pos_bias_v"]).transpose(0, 2, 1, 3)                        # [B,nH,T,d]
    bd = _rel_shift(jnp.matmul(q_v, pos, precision=HP))                       # [B,nH,T,T]
    q_u = (q4 + p["pos_bias_u"]).transpose(0, 2, 1, 3)                        # [B,nH,T,d]
    k_h = k.reshape(B, T, num_heads, d).transpose(0, 2, 1, 3)
    v_h = v.reshape(B, T, num_heads, d).transpose(0, 2, 1, 3)
    wo_h = p["wo"].reshape(num_heads, d, H)
    x = pallas_attention_core(q_u, k_h, v_h, bd, wo_h, p["bo"], residual,
                              num_heads=num_heads, head_size=d)

    # ---- Convolution module (fused, incl. residual) ----
    x = pallas_conv_module(x, p["conv"], shift_mats)

    # ---- FFN2 ----
    x = pallas_ffn(x, p["ffn2"])

    # ---- block-final LayerNorm ----
    x = pallas_layer_norm(x, p["final_ln_g"], p["final_ln_b"])
    return x


def conformer_encoder_forward(params, hidden_states, *, num_heads):
    B, T, H = hidden_states.shape
    Kd = params["layers"][0]["conv"]["dw"].shape[0]
    rel_emb = relative_position_embeddings(T, H, hidden_states.dtype)
    shift_mats = make_shift_matrices(T, Kd)
    x = hidden_states                                        # dropout: identity (eval)
    for layer_p in params["layers"]:
        x = conformer_encoder_layer(x, layer_p, rel_emb, shift_mats, num_heads)
    x = pallas_layer_norm(x, params["ln_g"], params["ln_b"], eps=LN_EPS)
    return x


# --------------------------------------------------------------------------- #
# Pure-JAX reference (literal mirror of the PyTorch forward, eval mode)
# --------------------------------------------------------------------------- #
def _ref_ln(x, g, b, eps=LN_EPS):
    mu = x.mean(-1, keepdims=True)
    var = ((x - mu) ** 2).mean(-1, keepdims=True)
    return (x - mu) / jnp.sqrt(var + eps) * g + b


def _ref_ffn(x, p):
    h = _ref_ln(x, p["ln_g"], p["ln_b"])
    h = jnp.dot(h, p["w1"], precision=HP) + p["b1"]
    h = h * jax.nn.sigmoid(h)
    return jnp.dot(h, p["w2"], precision=HP) + p["b2"]


def _ref_attention(x, p, rel_emb, num_heads):
    B, T, H = x.shape
    d = H // num_heads
    x_ln = _ref_ln(x, p["attn_ln_g"], p["attn_ln_b"])
    q = jnp.dot(x_ln, p["wq"], precision=HP) + p["bq"]
    k = jnp.dot(x_ln, p["wk"], precision=HP) + p["bk"]
    v = jnp.dot(x_ln, p["wv"], precision=HP) + p["bv"]
    qh = q.reshape(B, T, num_heads, d)
    kh = k.reshape(B, T, num_heads, d).transpose(0, 2, 1, 3)
    vh = v.reshape(B, T, num_heads, d).transpose(0, 2, 1, 3)
    pos = jnp.dot(rel_emb, p["w_pos"], precision=HP)
    pos = pos.reshape(1, 2 * T - 1, num_heads, d).transpose(0, 2, 3, 1)
    q_u = (qh + p["pos_bias_u"]).transpose(0, 2, 1, 3)
    q_v = (qh + p["pos_bias_v"]).transpose(0, 2, 1, 3)
    scores_ac = jnp.matmul(q_u, kh.transpose(0, 1, 3, 2), precision=HP)
    scores_bd = _rel_shift(jnp.matmul(q_v, pos, precision=HP))
    scores = (scores_ac + scores_bd) / math.sqrt(d)
    probs = jax.nn.softmax(scores, axis=-1)
    ctx = jnp.matmul(probs, vh, precision=HP).transpose(0, 2, 1, 3).reshape(B, T, H)
    return x + jnp.dot(ctx, p["wo"], precision=HP) + p["bo"]


def _ref_conv_module(x, p):
    B, T, H = x.shape
    Kd = p["dw"].shape[0]
    pad = (Kd - 1) // 2
    h = _ref_ln(x, p["ln_g"], p["ln_b"])
    a = jnp.dot(h, p["pw1_a"], precision=HP)
    g = jnp.dot(h, p["pw1_b"], precision=HP)
    h = a * jax.nn.sigmoid(g)
    hp_pad = jnp.pad(h, ((0, 0), (pad, pad), (0, 0)))
    out = jnp.zeros_like(h)
    for k in range(Kd):
        out = out + hp_pad[:, k:k + T, :] * p["dw"][k][None, None, :]
    out = (out - p["bn_mean"]) / jnp.sqrt(p["bn_var"] + BN_EPS) * p["bn_g"] + p["bn_b"]
    out = out * jax.nn.sigmoid(out)
    out = jnp.dot(out, p["pw2"], precision=HP)
    return x + out


def ref_encoder(params, x, num_heads):
    B, T, H = x.shape
    rel_emb = relative_position_embeddings(T, H, x.dtype)
    for p in params["layers"]:
        x = x + 0.5 * _ref_ffn(x, p["ffn1"])
        x = _ref_attention(x, p, rel_emb, num_heads)
        x = _ref_conv_module(x, p["conv"])
        x = x + 0.5 * _ref_ffn(x, p["ffn2"])
        x = _ref_ln(x, p["final_ln_g"], p["final_ln_b"])
    return _ref_ln(x, params["ln_g"], params["ln_b"])


# --------------------------------------------------------------------------- #
# Parameter init
# --------------------------------------------------------------------------- #
class KeyGen:
    def __init__(self, key):
        self._key = key

    def __call__(self):
        self._key, sub = jax.random.split(self._key)
        return sub


def _dense(key, fan_in, shape):
    bound = 1.0 / math.sqrt(fan_in)
    return jax.random.uniform(key, shape, jnp.float32, -bound, bound)


def _init_ffn(kg, H, inter):
    return {
        "ln_g": jnp.ones((H,)) + 0.1 * jax.random.normal(kg(), (H,)),
        "ln_b": 0.1 * jax.random.normal(kg(), (H,)),
        "w1": _dense(kg(), H, (H, inter)),
        "b1": _dense(kg(), H, (inter,)),
        "w2": _dense(kg(), inter, (inter, H)),
        "b2": _dense(kg(), inter, (H,)),
    }


def _init_layer(kg, H, inter, num_heads, Kd):
    d = H // num_heads
    return {
        "ffn1": _init_ffn(kg, H, inter),
        "attn_ln_g": jnp.ones((H,)) + 0.1 * jax.random.normal(kg(), (H,)),
        "attn_ln_b": 0.1 * jax.random.normal(kg(), (H,)),
        "wq": _dense(kg(), H, (H, H)), "bq": _dense(kg(), H, (H,)),
        "wk": _dense(kg(), H, (H, H)), "bk": _dense(kg(), H, (H,)),
        "wv": _dense(kg(), H, (H, H)), "bv": _dense(kg(), H, (H,)),
        "wo": _dense(kg(), H, (H, H)), "bo": _dense(kg(), H, (H,)),
        "w_pos": _dense(kg(), H, (H, H)),
        "pos_bias_u": 0.1 * jax.random.normal(kg(), (num_heads, d)),
        "pos_bias_v": 0.1 * jax.random.normal(kg(), (num_heads, d)),
        "conv": {
            "ln_g": jnp.ones((H,)) + 0.1 * jax.random.normal(kg(), (H,)),
            "ln_b": 0.1 * jax.random.normal(kg(), (H,)),
            "pw1_a": _dense(kg(), H, (H, H)),
            "pw1_b": _dense(kg(), H, (H, H)),
            "dw": _dense(kg(), Kd, (Kd, H)),
            "pw2": _dense(kg(), H, (H, H)),
            "bn_g": jnp.ones((H,)) + 0.1 * jax.random.normal(kg(), (H,)),
            "bn_b": 0.1 * jax.random.normal(kg(), (H,)),
            "bn_mean": 0.1 * jax.random.normal(kg(), (H,)),
            "bn_var": jnp.abs(jax.random.normal(kg(), (H,))) * 0.1 + 1.0,
        },
        "ffn2": _init_ffn(kg, H, inter),
        "final_ln_g": jnp.ones((H,)) + 0.1 * jax.random.normal(kg(), (H,)),
        "final_ln_b": 0.1 * jax.random.normal(kg(), (H,)),
    }


# --------------------------------------------------------------------------- #
# Main
# --------------------------------------------------------------------------- #
if __name__ == "__main__":
    B, T, H = 2, 16, 128            # hidden_size multiple of 128 -> lane-dense kernels
    num_heads, inter, Kd, num_layers = 4, 256, 5, 2

    kg = KeyGen(jax.random.PRNGKey(0))
    x = jax.random.normal(kg(), (B, T, H), dtype=jnp.float32)
    params = {
        "layers": [_init_layer(kg, H, inter, num_heads, Kd) for _ in range(num_layers)],
        "ln_g": jnp.ones((H,)) + 0.1 * jax.random.normal(kg(), (H,)),
        "ln_b": 0.1 * jax.random.normal(kg(), (H,)),
    }

    run = jax.jit(functools.partial(conformer_encoder_forward, num_heads=num_heads))
    out = jax.block_until_ready(run(params, x))

    ref = ref_encoder(params, x, num_heads)
    assert out.shape == (B, T, H), out.shape
    max_err = float(jnp.max(jnp.abs(out - ref)))
    assert jnp.allclose(out, ref, atol=2e-2, rtol=2e-2), max_err

    print("KERNEL_OK")
</pallas_src>

<mosaic_0001>
module attributes {stable_mosaic.version = 11 : i64} {
  func.func @_ffn_kernel(%arg0: i32, %arg1: memref<32x128xf32, #tpu.memory_space<vmem>>, %arg2: memref<1x128xf32, #tpu.memory_space<vmem>>, %arg3: memref<1x128xf32, #tpu.memory_space<vmem>>, %arg4: memref<128x256xf32, #tpu.memory_space<vmem>>, %arg5: memref<1x256xf32, #tpu.memory_space<vmem>>, %arg6: memref<256x128xf32, #tpu.memory_space<vmem>>, %arg7: memref<1x128xf32, #tpu.memory_space<vmem>>, %arg8: memref<32x128xf32, #tpu.memory_space<vmem>>) attributes {dimension_semantics = [#tpu.dimension_semantics<parallel>], iteration_bounds = array<i64: 1>, scalar_prefetch = 0 : i64, scratch_operands = 0 : i64, tpu.core_type = #tpu.core_type<tc>, window_params = [{transform_indices = @transform_0, window_bounds = array<i64: 32, 128>}, {pipeline_mode = #tpu.pipeline_mode<synchronous>, transform_indices = @transform_1, window_bounds = array<i64: 1, 128>}, {pipeline_mode = #tpu.pipeline_mode<synchronous>, transform_indices = @transform_2, window_bounds = array<i64: 1, 128>}, {pipeline_mode = #tpu.pipeline_mode<synchronous>, transform_indices = @transform_3, window_bounds = array<i64: 128, 256>}, {pipeline_mode = #tpu.pipeline_mode<synchronous>, transform_indices = @transform_4, window_bounds = array<i64: 1, 256>}, {pipeline_mode = #tpu.pipeline_mode<synchronous>, transform_indices = @transform_5, window_bounds = array<i64: 256, 128>}, {pipeline_mode = #tpu.pipeline_mode<synchronous>, transform_indices = @transform_6, window_bounds = array<i64: 1, 128>}, {transform_indices = @transform_7, window_bounds = array<i64: 32, 128>}]} {
    %c0 = arith.constant 0 : index
    %c0_0 = arith.constant 0 : index
    %0 = vector.load %arg1[%c0, %c0_0] : memref<32x128xf32, #tpu.memory_space<vmem>>, vector<32x128xf32>
    %c0_1 = arith.constant 0 : index
    %c0_2 = arith.constant 0 : index
    %1 = vector.load %arg2[%c0_1, %c0_2] : memref<1x128xf32, #tpu.memory_space<vmem>>, vector<1x128xf32>
    %c0_3 = arith.constant 0 : index
    %c0_4 = arith.constant 0 : index
    %2 = vector.load %arg3[%c0_3, %c0_4] : memref<1x128xf32, #tpu.memory_space<vmem>>, vector<1x128xf32>
    %cst = arith.constant dense<0.000000e+00> : vector<32xf32>
    %3 = vector.multi_reduction <add>, %0, %cst [1] : vector<32x128xf32> to vector<32xf32>
    %4 = vector.shape_cast %3 : vector<32xf32> to vector<32x1xf32>
    %cst_5 = arith.constant 1.280000e+02 : f32
    %5 = vector.broadcast %cst_5 : f32 to vector<32x1xf32>
    %6 = arith.divf %4, %5 : vector<32x1xf32>
    %7 = vector.broadcast %6 : vector<32x1xf32> to vector<32x128xf32>
    %8 = arith.subf %0, %7 : vector<32x128xf32>
    %9 = arith.mulf %8, %8 : vector<32x128xf32>
    %cst_6 = arith.constant dense<0.000000e+00> : vector<32xf32>
    %10 = vector.multi_reduction <add>, %9, %cst_6 [1] : vector<32x128xf32> to vector<32xf32>
    %11 = vector.shape_cast %10 : vector<32xf32> to vector<32x1xf32>
    %cst_7 = arith.constant 1.280000e+02 : f32
    %12 = vector.broadcast %cst_7 : f32 to vector<32x1xf32>
    %13 = arith.divf %11, %12 : vector<32x1xf32>
    %cst_8 = arith.constant 9.99999974E-6 : f32
    %14 = vector.broadcast %cst_8 : f32 to vector<32x1xf32>
    %15 = arith.addf %13, %14 : vector<32x1xf32>
    %16 = math.rsqrt %15 : vector<32x1xf32>
    %17 = vector.broadcast %16 : vector<32x1xf32> to vector<32x128xf32>
    %18 = arith.mulf %8, %17 : vector<32x128xf32>
    %19 = vector.broadcast %1 : vector<1x128xf32> to vector<32x128xf32>
    %20 = arith.mulf %18, %19 : vector<32x128xf32>
    %21 = vector.broadcast %2 : vector<1x128xf32> to vector<32x128xf32>
    %22 = arith.addf %20, %21 : vector<32x128xf32>
    %c0_9 = arith.constant 0 : index
    %c0_10 = arith.constant 0 : index
    %23 = vector.load %arg4[%c0_9, %c0_10] : memref<128x256xf32, #tpu.memory_space<vmem>>, vector<128x256xf32>
    %cst_11 = arith.constant dense<0.000000e+00> : vector<32x256xf32>
    %24 = tpu.matmul %22, %23, %cst_11 {dimension_numbers = #tpu.dot_dimension_numbers<[1], [0], [0], [1], [0, 0, 1, 1], [], []>} : vector<32x128xf32>, vector<128x256xf32>, vector<32x256xf32> -> vector<32x256xf32>
    %c0_12 = arith.constant 0 : index
    %c0_13 = arith.constant 0 : index
    %25 = vector.load %arg5[%c0_12, %c0_13] : memref<1x256xf32, #tpu.memory_space<vmem>>, vector<1x256xf32>
    %26 = vector.broadcast %25 : vector<1x256xf32> to vector<32x256xf32>
    %27 = arith.addf %24, %26 : vector<32x256xf32>
    %28 = arith.negf %27 : vector<32x256xf32>
    %29 = math.exp %28 : vector<32x256xf32>
    %cst_14 = arith.constant 1.000000e+00 : f32
    %30 = vector.broadcast %cst_14 : f32 to vector<32x256xf32>
    %31 = arith.addf %30, %29 : vector<32x256xf32>
    %32 = arith.divf %30, %31 : vector<32x256xf32>
    %33 = arith.mulf %27, %32 : vector<32x256xf32>
    %c0_15 = arith.constant 0 : index
    %c0_16 = arith.constant 0 : index
    %34 = vector.load %arg6[%c0_15, %c0_16] : memref<256x128xf32, #tpu.memory_space<vmem>>, vector<256x128xf32>
    %cst_17 = arith.constant dense<0.000000e+00> : vector<32x128xf32>
    %35 = tpu.matmul %33, %34, %cst_17 {dimension_numbers = #tpu.dot_dimension_numbers<[1], [0], [0], [1], [0, 0, 1, 1], [], []>} : vector<32x256xf32>, vector<256x128xf32>, vector<32x128xf32> -> vector<32x128xf32>
    %c0_18 = arith.constant 0 : index
    %c0_19 = arith.constant 0 : index
    %36 = vector.load %arg7[%c0_18, %c0_19] : memref<1x128xf32, #tpu.memory_space<vmem>>, vector<1x128xf32>
    %37 = vector.broadcast %36 : vector<1x128xf32> to vector<32x128xf32>
    %38 = arith.addf %35, %37 : vector<32x128xf32>
    %cst_20 = arith.constant 5.000000e-01 : f32
    %39 = vector.broadcast %cst_20 : f32 to vector<32x128xf32>
    %40 = arith.mulf %39, %38 : vector<32x128xf32>
    %41 = arith.addf %0, %40 : vector<32x128xf32>
    %c0_21 = arith.constant 0 : index
    %c0_22 = arith.constant 0 : index
    %42 = vector.load %arg8[%c0_21, %c0_22] : memref<32x128xf32, #tpu.memory_space<vmem>>, vector<32x128xf32>
    tpu.vector_store %arg8[%c0_21, %c0_22], %41 {strides = array<i32>} : memref<32x128xf32, #tpu.memory_space<vmem>>, vector<32x128xf32>,
    return
  }
  func.func @transform_0(%arg0: i32) -> (i32, i32) {
    %c0_i32 = arith.constant 0 : i32
    %c0_i32_0 = arith.constant 0 : i32
    return %arg0, %c0_i32 : i32, i32
  }
  func.func @transform_1(%arg0: i32) -> (i32, i32) {
    %c0_i32 = arith.constant 0 : i32
    %c0_i32_0 = arith.constant 0 : i32
    %c0_i32_1 = arith.constant 0 : i32
    return %c0_i32, %c0_i32_0 : i32, i32
  }
  func.func @transform_2(%arg0: i32) -> (i32, i32) {
    %c0_i32 = arith.constant 0 : i32
    %c0_i32_0 = arith.constant 0 : i32
    %c0_i32_1 = arith.constant 0 : i32
    return %c0_i32, %c0_i32_0 : i32, i32
  }
  func.func @transform_3(%arg0: i32) -> (i32, i32) {
    %c0_i32 = arith.constant 0 : i32
    %c0_i32_0 = arith.constant 0 : i32
    %c0_i32_1 = arith.constant 0 : i32
    return %c0_i32, %c0_i32_0 : i32, i32
  }
  func.func @transform_4(%arg0: i32) -> (i32, i32) {
    %c0_i32 = arith.constant 0 : i32
    %c0_i32_0 = arith.constant 0 : i32
    %c0_i32_1 = arith.constant 0 : i32
    return %c0_i32, %c0_i32_0 : i32, i32
  }
  func.func @transform_5(%arg0: i32) -> (i32, i32) {
    %c0_i32 = arith.constant 0 : i32
    %c0_i32_0 = arith.constant 0 : i32
    %c0_i32_1 = arith.constant 0 : i32
    return %c0_i32, %c0_i32_0 : i32, i32
  }
  func.func @transform_6(%arg0: i32) -> (i32, i32) {
    %c0_i32 = arith.constant 0 : i32
    %c0_i32_0 = arith.constant 0 : i32
    %c0_i32_1 = arith.constant 0 : i32
    return %c0_i32, %c0_i32_0 : i32, i32
  }
  func.func @transform_7(%arg0: i32) -> (i32, i32) {
    %c0_i32 = arith.constant 0 : i32
    %c0_i32_0 = arith.constant 0 : i32
    return %arg0, %c0_i32 : i32, i32
  }
}

module attributes {stable_mosaic.version = 11 : i64} {
  func.func @_layernorm_kernel(%arg0: i32, %arg1: memref<32x128xf32, #tpu.memory_space<vmem>>, %arg2: memref<1x128xf32, #tpu.memory_space<vmem>>, %arg3: memref<1x128xf32, #tpu.memory_space<vmem>>, %arg4: memref<32x128xf32, #tpu.memory_space<vmem>>) attributes {dimension_semantics = [#tpu.dimension_semantics<parallel>], iteration_bounds = array<i64: 1>, scalar_prefetch = 0 : i64, scratch_operands = 0 : i64, tpu.core_type = #tpu.core_type<tc>, window_params = [{transform_indices = @transform_0, window_bounds = array<i64: 32, 128>}, {pipeline_mode = #tpu.pipeline_mode<synchronous>, transform_indices = @transform_1, window_bounds = array<i64: 1, 128>}, {pipeline_mode = #tpu.pipeline_mode<synchronous>, transform_indices = @transform_2, window_bounds = array<i64: 1, 128>}, {transform_indices = @transform_3, window_bounds = array<i64: 32, 128>}]} {
    %c0 = arith.constant 0 : index
    %c0_0 = arith.constant 0 : index
    %0 = vector.load %arg1[%c0, %c0_0] : memref<32x128xf32, #tpu.memory_space<vmem>>, vector<32x128xf32>
    %c0_1 = arith.constant 0 : index
    %c0_2 = arith.constant 0 : index
    %1 = vector.load %arg2[%c0_1, %c0_2] : memref<1x128xf32, #tpu.memory_space<vmem>>, vector<1x128xf32>
    %c0_3 = arith.constant 0 : index
    %c0_4 = arith.constant 0 : index
    %2 = vector.load %arg3[%c0_3, %c0_4] : memref<1x128xf32, #tpu.memory_space<vmem>>, vector<1x128xf32>
    %cst = arith.constant dense<0.000000e+00> : vector<32xf32>
    %3 = vector.multi_reduction <add>, %0, %cst [1] : vector<32x128xf32> to vector<32xf32>
    %4 = vector.shape_cast %3 : vector<32xf32> to vector<32x1xf32>
    %cst_5 = arith.constant 1.280000e+02 : f32
    %5 = vector.broadcast %cst_5 : f32 to vector<32x1xf32>
    %6 = arith.divf %4, %5 : vector<32x1xf32>
    %7 = vector.broadcast %6 : vector<32x1xf32> to vector<32x128xf32>
    %8 = arith.subf %0, %7 : vector<32x128xf32>
    %9 = arith.mulf %8, %8 : vector<32x128xf32>
    %cst_6 = arith.constant dense<0.000000e+00> : vector<32xf32>
    %10 = vector.multi_reduction <add>, %9, %cst_6 [1] : vector<32x128xf32> to vector<32xf32>
    %11 = vector.shape_cast %10 : vector<32xf32> to vector<32x1xf32>
    %cst_7 = arith.constant 1.280000e+02 : f32
    %12 = vector.broadcast %cst_7 : f32 to vector<32x1xf32>
    %13 = arith.divf %11, %12 : vector<32x1xf32>
    %cst_8 = arith.constant 9.99999974E-6 : f32
    %14 = vector.broadcast %cst_8 : f32 to vector<32x1xf32>
    %15 = arith.addf %13, %14 : vector<32x1xf32>
    %16 = math.rsqrt %15 : vector<32x1xf32>
    %17 = vector.broadcast %16 : vector<32x1xf32> to vector<32x128xf32>
    %18 = arith.mulf %8, %17 : vector<32x128xf32>
    %19 = vector.broadcast %1 : vector<1x128xf32> to vector<32x128xf32>
    %20 = arith.mulf %18, %19 : vector<32x128xf32>
    %21 = vector.broadcast %2 : vector<1x128xf32> to vector<32x128xf32>
    %22 = arith.addf %20, %21 : vector<32x128xf32>
    %c0_9 = arith.constant 0 : index
    %c0_10 = arith.constant 0 : index
    %23 = vector.load %arg4[%c0_9, %c0_10] : memref<32x128xf32, #tpu.memory_space<vmem>>, vector<32x128xf32>
    tpu.vector_store %arg4[%c0_9, %c0_10], %22 {strides = array<i32>} : memref<32x128xf32, #tpu.memory_space<vmem>>, vector<32x128xf32>,
    return
  }
  func.func @transform_0(%arg0: i32) -> (i32, i32) {
    %c0_i32 = arith.constant 0 : i32
    %c0_i32_0 = arith.constant 0 : i32
    return %arg0, %c0_i32 : i32, i32
  }
  func.func @transform_1(%arg0: i32) -> (i32, i32) {
    %c0_i32 = arith.constant 0 : i32
    %c0_i32_0 = arith.constant 0 : i32
    %c0_i32_1 = arith.constant 0 : i32
    return %c0_i32, %c0_i32_0 : i32, i32
  }
  func.func @transform_2(%arg0: i32) -> (i32, i32) {
    %c0_i32 = arith.constant 0 : i32
    %c0_i32_0 = arith.constant 0 : i32
    %c0_i32_1 = arith.constant 0 : i32
    return %c0_i32, %c0_i32_0 : i32, i32
  }
  func.func @transform_3(%arg0: i32) -> (i32, i32) {
    %c0_i32 = arith.constant 0 : i32
    %c0_i32_0 = arith.constant 0 : i32
    return %arg0, %c0_i32 : i32, i32
  }
}

module attributes {stable_mosaic.version = 11 : i64} {
  func.func @_attention_kernel(%arg0: i32, %arg1: memref<1x4x16x32xf32, #tpu.memory_space<vmem>>, %arg2: memref<1x4x16x32xf32, #tpu.memory_space<vmem>>, %arg3: memref<1x4x16x32xf32, #tpu.memory_space<vmem>>, %arg4: memref<1x4x16x16xf32, #tpu.memory_space<vmem>>, %arg5: memref<4x32x128xf32, #tpu.memory_space<vmem>>, %arg6: memref<1x128xf32, #tpu.memory_space<vmem>>, %arg7: memref<1x16x128xf32, #tpu.memory_space<vmem>>, %arg8: memref<1x16x128xf32, #tpu.memory_space<vmem>>) attributes {dimension_semantics = [#tpu.dimension_semantics<parallel>], iteration_bounds = array<i64: 2>, scalar_prefetch = 0 : i64, scratch_operands = 0 : i64, tpu.core_type = #tpu.core_type<tc>, window_params = [{transform_indices = @transform_0, window_bounds = array<i64: 1, 4, 16, 32>}, {transform_indices = @transform_1, window_bounds = array<i64: 1, 4, 16, 32>}, {transform_indices = @transform_2, window_bounds = array<i64: 1, 4, 16, 32>}, {transform_indices = @transform_3, window_bounds = array<i64: 1, 4, 16, 16>}, {pipeline_mode = #tpu.pipeline_mode<synchronous>, transform_indices = @transform_4, window_bounds = array<i64: 4, 32, 128>}, {pipeline_mode = #tpu.pipeline_mode<synchronous>, transform_indices = @transform_5, window_bounds = array<i64: 1, 128>}, {transform_indices = @transform_6, window_bounds = array<i64: 1, 16, 128>}, {transform_indices = @transform_7, window_bounds = array<i64: 1, 16, 128>}]} {
    %c0 = arith.constant 0 : index
    %c0_0 = arith.constant 0 : index
    %0 = vector.load %arg6[%c0, %c0_0] : memref<1x128xf32, #tpu.memory_space<vmem>>, vector<1x128xf32>
    %1 = vector.shape_cast %0 : vector<1x128xf32> to vector<1x128xf32>
    %2 = vector.broadcast %1 : vector<1x128xf32> to vector<16x128xf32>
    %c0_1 = arith.constant 0 : index
    %c0_2 = arith.constant 0 : index
    %c0_3 = arith.constant 0 : index
    %c0_4 = arith.constant 0 : index
    %3 = vector.load %arg1[%c0_1, %c0_2, %c0_3, %c0_4] : memref<1x4x16x32xf32, #tpu.memory_space<vmem>>, vector<1x1x16x32xf32>
    %4 = vector.shape_cast %3 : vector<1x1x16x32xf32> to vector<16x32xf32>
    %c0_5 = arith.constant 0 : index
    %c0_6 = arith.constant 0 : index
    %c0_7 = arith.constant 0 : index
    %c0_8 = arith.constant 0 : index
    %5 = vector.load %arg2[%c0_5, %c0_6, %c0_7, %c0_8] : memref<1x4x16x32xf32, #tpu.memory_space<vmem>>, vector<1x1x16x32xf32>
    %6 = vector.shape_cast %5 : vector<1x1x16x32xf32> to vector<16x32xf32>
    %c0_9 = arith.constant 0 : index
    %c0_10 = arith.constant 0 : index
    %c0_11 = arith.constant 0 : index
    %c0_12 = arith.constant 0 : index
    %7 = vector.load %arg3[%c0_9, %c0_10, %c0_11, %c0_12] : memref<1x4x16x32xf32, #tpu.memory_space<vmem>>, vector<1x1x16x32xf32>
    %8 = vector.shape_cast %7 : vector<1x1x16x32xf32> to vector<16x32xf32>
    %cst = arith.constant dense<0.000000e+00> : vector<16x16xf32>
    %9 = tpu.matmul %4, %6, %cst {dimension_numbers = #tpu.dot_dimension_numbers<[1], [1], [0], [0], [0, 0, 1, 0], [], []>} : vector<16x32xf32>, vector<16x32xf32>, vector<16x16xf32> -> vector<16x16xf32>
    %c0_13 = arith.constant 0 : index
    %c0_14 = arith.constant 0 : index
    %c0_15 = arith.constant 0 : index
    %c0_16 = arith.constant 0 : index
    %10 = vector.load %arg4[%c0_13, %c0_14, %c0_15, %c0_16] : memref<1x4x16x16xf32, #tpu.memory_space<vmem>>, vector<1x1x16x16xf32>
    %11 = vector.shape_cast %10 : vector<1x1x16x16xf32> to vector<16x16xf32>
    %12 = arith.addf %9, %11 : vector<16x16xf32>
    %cst_17 = arith.constant 0.176776692 : f32
    %13 = vector.broadcast %cst_17 : f32 to vector<16x16xf32>
    %14 = arith.mulf %12, %13 : vector<16x16xf32>
    %cst_18 = arith.constant dense<0xFF800000> : vector<16xf32>
    %15 = vector.multi_reduction <maximumf>, %14, %cst_18 [1] : vector<16x16xf32> to vector<16xf32>
    %16 = vector.shape_cast %15 : vector<16xf32> to vector<16x1xf32>
    %17 = vector.broadcast %16 : vector<16x1xf32> to vector<16x16xf32>
    %18 = arith.subf %14, %17 : vector<16x16xf32>
    %19 = math.exp %18 : vector<16x16xf32>
    %cst_19 = arith.constant dense<0.000000e+00> : vector<16xf32>
    %20 = vector.multi_reduction <add>, %19, %cst_19 [1] : vector<16x16xf32> to vector<16xf32>
    %21 = vector.shape_cast %20 : vector<16xf32> to vector<16x1xf32>
    %22 = vector.broadcast %21 : vector<16x1xf32> to vector<16x16xf32>
    %23 = arith.divf %19, %22 : vector<16x16xf32>
    %cst_20 = arith.constant dense<0.000000e+00> : vector<16x32xf32>
    %24 = tpu.matmul %23, %8, %cst_20 {dimension_numbers = #tpu.dot_dimension_numbers<[1], [0], [0], [1], [0, 0, 1, 1], [], []>} : vector<16x16xf32>, vector<16x32xf32>, vector<16x32xf32> -> vector<16x32xf32>
    %c0_21 = arith.constant 0 : index
    %c0_22 = arith.constant 0 : index
    %c0_23 = arith.constant 0 : index
    %25 = vector.load %arg5[%c0_21, %c0_22, %c0_23] : memref<4x32x128xf32, #tpu.memory_space<vmem>>, vector<1x32x128xf32>
    %26 = vector.shape_cast %25 : vector<1x32x128xf32> to vector<32x128xf32>
    %cst_24 = arith.constant dense<0.000000e+00> : vector<16x128xf32>
    %27 = tpu.matmul %24, %26, %cst_24 {dimension_numbers = #tpu.dot_dimension_numbers<[1], [0], [0], [1], [0, 0, 1, 1], [], []>} : vector<16x32xf32>, vector<32x128xf32>, vector<16x128xf32> -> vector<16x128xf32>
    %28 = arith.addf %2, %27 : vector<16x128xf32>
    %c0_25 = arith.constant 0 : index
    %c1 = arith.constant 1 : index
    %c0_26 = arith.constant 0 : index
    %c0_27 = arith.constant 0 : index
    %29 = vector.load %arg1[%c0_25, %c1, %c0_26, %c0_27] : memref<1x4x16x32xf32, #tpu.memory_space<vmem>>, vector<1x1x16x32xf32>
    %30 = vector.shape_cast %29 : vector<1x1x16x32xf32> to vector<16x32xf32>
    %c0_28 = arith.constant 0 : index
    %c1_29 = arith.constant 1 : index
    %c0_30 = arith.constant 0 : index
    %c0_31 = arith.constant 0 : index
    %31 = vector.load %arg2[%c0_28, %c1_29, %c0_30, %c0_31] : memref<1x4x16x32xf32, #tpu.memory_space<vmem>>, vector<1x1x16x32xf32>
    %32 = vector.shape_cast %31 : vector<1x1x16x32xf32> to vector<16x32xf32>
    %c0_32 = arith.constant 0 : index
    %c1_33 = arith.constant 1 : index
    %c0_34 = arith.constant 0 : index
    %c0_35 = arith.constant 0 : index
    %33 = vector.load %arg3[%c0_32, %c1_33, %c0_34, %c0_35] : memref<1x4x16x32xf32, #tpu.memory_space<vmem>>, vector<1x1x16x32xf32>
    %34 = vector.shape_cast %33 : vector<1x1x16x32xf32> to vector<16x32xf32>
    %cst_36 = arith.constant dense<0.000000e+00> : vector<16x16xf32>
    %35 = tpu.matmul %30, %32, %cst_36 {dimension_numbers = #tpu.dot_dimension_numbers<[1], [1], [0], [0], [0, 0, 1, 0], [], []>} : vector<16x32xf32>, vector<16x32xf32>, vector<16x16xf32> -> vector<16x16xf32>
    %c0_37 = arith.constant 0 : index
    %c1_38 = arith.constant 1 : index
    %c0_39 = arith.constant 0 : index
    %c0_40 = arith.constant 0 : index
    %36 = vector.load %arg4[%c0_37, %c1_38, %c0_39, %c0_40] : memref<1x4x16x16xf32, #tpu.memory_space<vmem>>, vector<1x1x16x16xf32>
    %37 = vector.shape_cast %36 : vector<1x1x16x16xf32> to vector<16x16xf32>
    %38 = arith.addf %35, %37 : vector<16x16xf32>
    %cst_41 = arith.constant 0.176776692 : f32
    %39 = vector.broadcast %cst_41 : f32 to vector<16x16xf32>
    %40 = arith.mulf %38, %39 : vector<16x16xf32>
    %cst_42 = arith.constant dense<0xFF800000> : vector<16xf32>
    %41 = vector.multi_reduction <maximumf>, %40, %cst_42 [1] : vector<16x16xf32> to vector<16xf32>
    %42 = vector.shape_cast %41 : vector<16xf32> to vector<16x1xf32>
    %43 = vector.broadcast %42 : vector<16x1xf32> to vector<16x16xf32>
    %44 = arith.subf %40, %43 : vector<16x16xf32>
    %45 = math.exp %44 : vector<16x16xf32>
    %cst_43 = arith.constant dense<0.000000e+00> : vector<16xf32>
    %46 = vector.multi_reduction <add>, %45, %cst_43 [1] : vector<16x16xf32> to vector<16xf32>
    %47 = vector.shape_cast %46 : vector<16xf32> to vector<16x1xf32>
    %48 = vector.broadcast %47 : vector<16x1xf32> to vector<16x16xf32>
    %49 = arith.divf %45, %48 : vector<16x16xf32>
    %cst_44 = arith.constant dense<0.000000e+00> : vector<16x32xf32>
    %50 = tpu.matmul %49, %34, %cst_44 {dimension_numbers = #tpu.dot_dimension_numbers<[1], [0], [0], [1], [0, 0, 1, 1], [], []>} : vector<16x16xf32>, vector<16x32xf32>, vector<16x32xf32> -> vector<16x32xf32>
    %c1_45 = arith.constant 1 : index
    %c0_46 = arith.constant 0 : index
    %c0_47 = arith.constant 0 : index
    %51 = vector.load %arg5[%c1_45, %c0_46, %c0_47] : memref<4x32x128xf32, #tpu.memory_space<vmem>>, vector<1x32x128xf32>
    %52 = vector.shape_cast %51 : vector<1x32x128xf32> to vector<32x128xf32>
    %cst_48 = arith.constant dense<0.000000e+00> : vector<16x128xf32>
    %53 = tpu.matmul %50, %52, %cst_48 {dimension_numbers = #tpu.dot_dimension_numbers<[1], [0], [0], [1], [0, 0, 1, 1], [], []>} : vector<16x32xf32>, vector<32x128xf32>, vector<16x128xf32> -> vector<16x128xf32>
    %54 = arith.addf %28, %53 : vector<16x128xf32>
    %c0_49 = arith.constant 0 : index
    %c2 = arith.constant 2 : index
    %c0_50 = arith.constant 0 : index
    %c0_51 = arith.constant 0 : index
    %55 = vector.load %arg1[%c0_49, %c2, %c0_50, %c0_51] : memref<1x4x16x32xf32, #tpu.memory_space<vmem>>, vector<1x1x16x32xf32>
    %56 = vector.shape_cast %55 : vector<1x1x16x32xf32> to vector<16x32xf32>
    %c0_52 = arith.constant 0 : index
    %c2_53 = arith.constant 2 : index
    %c0_54 = arith.constant 0 : index
    %c0_55 = arith.constant 0 : index
    %57 = vector.load %arg2[%c0_52, %c2_53, %c0_54, %c0_55] : memref<1x4x16x32xf32, #tpu.memory_space<vmem>>, vector<1x1x16x32xf32>
    %58 = vector.shape_cast %57 : vector<1x1x16x32xf32> to vector<16x32xf32>
    %c0_56 = arith.constant 0 : index
    %c2_57 = arith.constant 2 : index
    %c0_58 = arith.constant 0 : index
    %c0_59 = arith.constant 0 : index
    %59 = vector.load %arg3[%c0_56, %c2_57, %c0_58, %c0_59] : memref<1x4x16x32xf32, #tpu.memory_space<vmem>>, vector<1x1x16x32xf32>
    %60 = vector.shape_cast %59 : vector<1x1x16x32xf32> to vector<16x32xf32>
    %cst_60 = arith.constant dense<0.000000e+00> : vector<16x16xf32>
    %61 = tpu.matmul %56, %58, %cst_60 {dimension_numbers = #tpu.dot_dimension_numbers<[1], [1], [0], [0], [0, 0, 1, 0], [], []>} : vector<16x32xf32>, vector<16x32xf32>, vector<16x16xf32> -> vector<16x16xf32>
    %c0_61 = arith.constant 0 : index
    %c2_62 = arith.constant 2 : index
    %c0_63 = arith.constant 0 : index
    %c0_64 = arith.constant 0 : index
    %62 = vector.load %arg4[%c0_61, %c2_62, %c0_63, %c0_64] : memref<1x4x16x16xf32, #tpu.memory_space<vmem>>, vector<1x1x16x16xf32>
    %63 = vector.shape_cast %62 : vector<1x1x16x16xf32> to vector<16x16xf32>
    %64 = arith.addf %61, %63 : vector<16x16xf32>
    %cst_65 = arith.constant 0.176776692 : f32
    %65 = vector.broadcast %cst_65 : f32 to vector<16x16xf32>
    %66 = arith.mulf %64, %65 : vector<16x16xf32>
    %cst_66 = arith.constant dense<0xFF800000> : vector<16xf32>
    %67 = vector.multi_reduction <maximumf>, %66, %cst_66 [1] : vector<16x16xf32> to vector<16xf32>
    %68 = vector.shape_cast %67 : vector<16xf32> to vector<16x1xf32>
    %69 = vector.broadcast %68 : vector<16x1xf32> to vector<16x16xf32>
    %70 = arith.subf %66, %69 : vector<16x16xf32>
    %71 = math.exp %70 : vector<16x16xf32>
    %cst_67 = arith.constant dense<0.000000e+00> : vector<16xf32>
    %72 = vector.multi_reduction <add>, %71, %cst_67 [1] : vector<16x16xf32> to vector<16xf32>
    %73 = vector.shape_cast %72 : vector<16xf32> to vector<16x1xf32>
    %74 = vector.broadcast %73 : vector<16x1xf32> to vector<16x16xf32>
    %75 = arith.divf %71, %74 : vector<16x16xf32>
    %cst_68 = arith.constant dense<0.000000e+00> : vector<16x32xf32>
    %76 = tpu.matmul %75, %60, %cst_68 {dimension_numbers = #tpu.dot_dimension_numbers<[1], [0], [0], [1], [0, 0, 1, 1], [], []>} : vector<16x16xf32>, vector<16x32xf32>, vector<16x32xf32> -> vector<16x32xf32>
    %c2_69 = arith.constant 2 : index
    %c0_70 = arith.constant 0 : index
    %c0_71 = arith.constant 0 : index
    %77 = vector.load %arg5[%c2_69, %c0_70, %c0_71] : memref<4x32x128xf32, #tpu.memory_space<vmem>>, vector<1x32x128xf32>
    %78 = vector.shape_cast %77 : vector<1x32x128xf32> to vector<32x128xf32>
    %cst_72 = arith.constant dense<0.000000e+00> : vector<16x128xf32>
    %79 = tpu.matmul %76, %78, %cst_72 {dimension_numbers = #tpu.dot_dimension_numbers<[1], [0], [0], [1], [0, 0, 1, 1], [], []>} : vector<16x32xf32>, vector<32x128xf32>, vector<16x128xf32> -> vector<16x128xf32>
    %80 = arith.addf %54, %79 : vector<16x128xf32>
    %c0_73 = arith.constant 0 : index
    %c3 = arith.constant 3 : index
    %c0_74 = arith.constant 0 : index
    %c0_75 = arith.constant 0 : index
    %81 = vector.load %arg1[%c0_73, %c3, %c0_74, %c0_75] : memref<1x4x16x32xf32, #tpu.memory_space<vmem>>, vector<1x1x16x32xf32>
    %82 = vector.shape_cast %81 : vector<1x1x16x32xf32> to vector<16x32xf32>
    %c0_76 = arith.constant 0 : index
    %c3_77 = arith.constant 3 : index
    %c0_78 = arith.constant 0 : index
    %c0_79 = arith.constant 0 : index
    %83 = vector.load %arg2[%c0_76, %c3_77, %c0_78, %c0_79] : memref<1x4x16x32xf32, #tpu.memory_space<vmem>>, vector<1x1x16x32xf32>
    %84 = vector.shape_cast %83 : vector<1x1x16x32xf32> to vector<16x32xf32>
    %c0_80 = arith.constant 0 : index
    %c3_81 = arith.constant 3 : index
    %c0_82 = arith.constant 0 : index
    %c0_83 = arith.constant 0 : index
    %85 = vector.load %arg3[%c0_80, %c3_81, %c0_82, %c0_83] : memref<1x4x16x32xf32, #tpu.memory_space<vmem>>, vector<1x1x16x32xf32>
    %86 = vector.shape_cast %85 : vector<1x1x16x32xf32> to vector<16x32xf32>
    %cst_84 = arith.constant dense<0.000000e+00> : vector<16x16xf32>
    %87 = tpu.matmul %82, %84, %cst_84 {dimension_numbers = #tpu.dot_dimension_numbers<[1], [1], [0], [0], [0, 0, 1, 0], [], []>} : vector<16x32xf32>, vector<16x32xf32>, vector<16x16xf32> -> vector<16x16xf32>
    %c0_85 = arith.constant 0 : index
    %c3_86 = arith.constant 3 : index
    %c0_87 = arith.constant 0 : index
    %c0_88 = arith.constant 0 : index
    %88 = vector.load %arg4[%c0_85, %c3_86, %c0_87, %c0_88] : memref<1x4x16x16xf32, #tpu.memory_space<vmem>>, vector<1x1x16x16xf32>
    %89 = vector.shape_cast %88 : vector<1x1x16x16xf32> to vector<16x16xf32>
    %90 = arith.addf %87, %89 : vector<16x16xf32>
    %cst_89 = arith.constant 0.176776692 : f32
    %91 = vector.broadcast %cst_89 : f32 to vector<16x16xf32>
    %92 = arith.mulf %90, %91 : vector<16x16xf32>
    %cst_90 = arith.constant dense<0xFF800000> : vector<16xf32>
    %93 = vector.multi_reduction <maximumf>, %92, %cst_90 [1] : vector<16x16xf32> to vector<16xf32>
    %94 = vector.shape_cast %93 : vector<16xf32> to vector<16x1xf32>
    %95 = vector.broadcast %94 : vector<16x1xf32> to vector<16x16xf32>
    %96 = arith.subf %92, %95 : vector<16x16xf32>
    %97 = math.exp %96 : vector<16x16xf32>
    %cst_91 = arith.constant dense<0.000000e+00> : vector<16xf32>
    %98 = vector.multi_reduction <add>, %97, %cst_91 [1] : vector<16x16xf32> to vector<16xf32>
    %99 = vector.shape_cast %98 : vector<16xf32> to vector<16x1xf32>
    %100 = vector.broadcast %99 : vector<16x1xf32> to vector<16x16xf32>
    %101 = arith.divf %97, %100 : vector<16x16xf32>
    %cst_92 = arith.constant dense<0.000000e+00> : vector<16x32xf32>
    %102 = tpu.matmul %101, %86, %cst_92 {dimension_numbers = #tpu.dot_dimension_numbers<[1], [0], [0], [1], [0, 0, 1, 1], [], []>} : vector<16x16xf32>, vector<16x32xf32>, vector<16x32xf32> -> vector<16x32xf32>
    %c3_93 = arith.constant 3 : index
    %c0_94 = arith.constant 0 : index
    %c0_95 = arith.constant 0 : index
    %103 = vector.load %arg5[%c3_93, %c0_94, %c0_95] : memref<4x32x128xf32, #tpu.memory_space<vmem>>, vector<1x32x128xf32>
    %104 = vector.shape_cast %103 : vector<1x32x128xf32> to vector<32x128xf32>
    %cst_96 = arith.constant dense<0.000000e+00> : vector<16x128xf32>
    %105 = tpu.matmul %102, %104, %cst_96 {dimension_numbers = #tpu.dot_dimension_numbers<[1], [0], [0], [1], [0, 0, 1, 1], [], []>} : vector<16x32xf32>, vector<32x128xf32>, vector<16x128xf32> -> vector<16x128xf32>
    %106 = arith.addf %80, %105 : vector<16x128xf32>
    %c0_97 = arith.constant 0 : index
    %c0_98 = arith.constant 0 : index
    %c0_99 = arith.constant 0 : index
    %107 = vector.load %arg7[%c0_97, %c0_98, %c0_99] : memref<1x16x128xf32, #tpu.memory_space<vmem>>, vector<1x16x128xf32>
    %108 = vector.shape_cast %107 : vector<1x16x128xf32> to vector<16x128xf32>
    %109 = arith.addf %108, %106 : vector<16x128xf32>
    %c0_100 = arith.constant 0 : index
    %c0_101 = arith.constant 0 : index
    %c0_102 = arith.constant 0 : index
    %110 = vector.load %arg8[%c0_100, %c0_101, %c0_102] : memref<1x16x128xf32, #tpu.memory_space<vmem>>, vector<1x16x128xf32>
    %111 = vector.shape_cast %110 : vector<1x16x128xf32> to vector<16x128xf32>
    %112 = vector.shape_cast %109 : vector<16x128xf32> to vector<1x16x128xf32>
    tpu.vector_store %arg8[%c0_100, %c0_101, %c0_102], %112 {strides = array<i32>} : memref<1x16x128xf32, #tpu.memory_space<vmem>>, vector<1x16x128xf32>,
    return
  }
  func.func @transform_0(%arg0: i32) -> (i32, i32, i32, i32) {
    %c0_i32 = arith.constant 0 : i32
    %c0_i32_0 = arith.constant 0 : i32
    %c0_i32_1 = arith.constant 0 : i32
    %c0_i32_2 = arith.constant 0 : i32
    return %arg0, %c0_i32, %c0_i32_0, %c0_i32_1 : i32, i32, i32, i32
  }
  func.func @transform_1(%arg0: i32) -> (i32, i32, i32, i32) {
    %c0_i32 = arith.constant 0 : i32
    %c0_i32_0 = arith.constant 0 : i32
    %c0_i32_1 = arith.constant 0 : i32
    %c0_i32_2 = arith.constant 0 : i32
    return %arg0, %c0_i32, %c0_i32_0, %c0_i32_1 : i32, i32, i32, i32
  }
  func.func @transform_2(%arg0: i32) -> (i32, i32, i32, i32) {
    %c0_i32 = arith.constant 0 : i32
    %c0_i32_0 = arith.constant 0 : i32
    %c0_i32_1 = arith.constant 0 : i32
    %c0_i32_2 = arith.constant 0 : i32
    return %arg0, %c0_i32, %c0_i32_0, %c0_i32_1 : i32, i32, i32, i32
  }
  func.func @transform_3(%arg0: i32) -> (i32, i32, i32, i32) {
    %c0_i32 = arith.constant 0 : i32
    %c0_i32_0 = arith.constant 0 : i32
    %c0_i32_1 = arith.constant 0 : i32
    %c0_i32_2 = arith.constant 0 : i32
    return %arg0, %c0_i32, %c0_i32_0, %c0_i32_1 : i32, i32, i32, i32
  }
  func.func @transform_4(%arg0: i32) -> (i32, i32, i32) {
    %c0_i32 = arith.constant 0 : i32
    %c0_i32_0 = arith.constant 0 : i32
    %c0_i32_1 = arith.constant 0 : i32
    %c0_i32_2 = arith.constant 0 : i32
    return %c0_i32, %c0_i32_0, %c0_i32_1 : i32, i32, i32
  }
  func.func @transform_5(%arg0: i32) -> (i32, i32) {
    %c0_i32 = arith.constant 0 : i32
    %c0_i32_0 = arith.constant 0 : i32
    %c0_i32_1 = arith.constant 0 : i32
    return %c0_i32, %c0_i32_0 : i32, i32
  }
  func.func @transform_6(%arg0: i32) -> (i32, i32, i32) {
    %c0_i32 = arith.constant 0 : i32
    %c0_i32_0 = arith.constant 0 : i32
    %c0_i32_1 = arith.constant 0 : i32
    return %arg0, %c0_i32, %c0_i32_0 : i32, i32, i32
  }
  func.func @transform_7(%arg0: i32) -> (i32, i32, i32) {
    %c0_i32 = arith.constant 0 : i32
    %c0_i32_0 = arith.constant 0 : i32
    %c0_i32_1 = arith.constant 0 : i32
    return %arg0, %c0_i32, %c0_i32_0 : i32, i32, i32
  }
}

module attributes {stable_mosaic.version = 11 : i64} {
  func.func @_conv_module_kernel(%arg0: i32, %arg1: memref<1x16x128xf32, #tpu.memory_space<vmem>>, %arg2: memref<1x128xf32, #tpu.memory_space<vmem>>, %arg3: memref<1x128xf32, #tpu.memory_space<vmem>>, %arg4: memref<128x128xf32, #tpu.memory_space<vmem>>, %arg5: memref<128x128xf32, #tpu.memory_space<vmem>>, %arg6: memref<5x16x16xf32, #tpu.memory_space<vmem>>, %arg7: memref<5x128xf32, #tpu.memory_space<vmem>>, %arg8: memref<1x128xf32, #tpu.memory_space<vmem>>, %arg9: memref<1x128xf32, #tpu.memory_space<vmem>>, %arg10: memref<128x128xf32, #tpu.memory_space<vmem>>, %arg11: memref<1x16x128xf32, #tpu.memory_space<vmem>>) attributes {dimension_semantics = [#tpu.dimension_semantics<parallel>], iteration_bounds = array<i64: 2>, scalar_prefetch = 0 : i64, scratch_operands = 0 : i64, tpu.core_type = #tpu.core_type<tc>, window_params = [{transform_indices = @transform_0, window_bounds = array<i64: 1, 16, 128>}, {pipeline_mode = #tpu.pipeline_mode<synchronous>, transform_indices = @transform_1, window_bounds = array<i64: 1, 128>}, {pipeline_mode = #tpu.pipeline_mode<synchronous>, transform_indices = @transform_2, window_bounds = array<i64: 1, 128>}, {pipeline_mode = #tpu.pipeline_mode<synchronous>, transform_indices = @transform_3, window_bounds = array<i64: 128, 128>}, {pipeline_mode = #tpu.pipeline_mode<synchronous>, transform_indices = @transform_4, window_bounds = array<i64: 128, 128>}, {pipeline_mode = #tpu.pipeline_mode<synchronous>, transform_indices = @transform_5, window_bounds = array<i64: 5, 16, 16>}, {pipeline_mode = #tpu.pipeline_mode<synchronous>, transform_indices = @transform_6, window_bounds = array<i64: 5, 128>}, {pipeline_mode = #tpu.pipeline_mode<synchronous>, transform_indices = @transform_7, window_bounds = array<i64: 1, 128>}, {pipeline_mode = #tpu.pipeline_mode<synchronous>, transform_indices = @transform_8, window_bounds = array<i64: 1, 128>}, {pipeline_mode = #tpu.pipeline_mode<synchronous>, transform_indices = @transform_9, window_bounds = array<i64: 128, 128>}, {transform_indices = @transform_10, window_bounds = array<i64: 1, 16, 128>}]} {
    %c0 = arith.constant 0 : index
    %c0_0 = arith.constant 0 : index
    %c0_1 = arith.constant 0 : index
    %0 = vector.load %arg1[%c0, %c0_0, %c0_1] : memref<1x16x128xf32, #tpu.memory_space<vmem>>, vector<1x16x128xf32>
    %1 = vector.shape_cast %0 : vector<1x16x128xf32> to vector<16x128xf32>
    %c0_2 = arith.constant 0 : index
    %c0_3 = arith.constant 0 : index
    %2 = vector.load %arg2[%c0_2, %c0_3] : memref<1x128xf32, #tpu.memory_space<vmem>>, vector<1x128xf32>
    %c0_4 = arith.constant 0 : index
    %c0_5 = arith.constant 0 : index
    %3 = vector.load %arg3[%c0_4, %c0_5] : memref<1x128xf32, #tpu.memory_space<vmem>>, vector<1x128xf32>
    %cst = arith.constant dense<0.000000e+00> : vector<16xf32>
    %4 = vector.multi_reduction <add>, %1, %cst [1] : vector<16x128xf32> to vector<16xf32>
    %5 = vector.shape_cast %4 : vector<16xf32> to vector<16x1xf32>
    %cst_6 = arith.constant 1.280000e+02 : f32
    %6 = vector.broadcast %cst_6 : f32 to vector<16x1xf32>
    %7 = arith.divf %5, %6 : vector<16x1xf32>
    %8 = vector.broadcast %7 : vector<16x1xf32> to vector<16x128xf32>
    %9 = arith.subf %1, %8 : vector<16x128xf32>
    %10 = arith.mulf %9, %9 : vector<16x128xf32>
    %cst_7 = arith.constant dense<0.000000e+00> : vector<16xf32>
    %11 = vector.multi_reduction <add>, %10, %cst_7 [1] : vector<16x128xf32> to vector<16xf32>
    %12 = vector.shape_cast %11 : vector<16xf32> to vector<16x1xf32>
    %cst_8 = arith.constant 1.280000e+02 : f32
    %13 = vector.broadcast %cst_8 : f32 to vector<16x1xf32>
    %14 = arith.divf %12, %13 : vector<16x1xf32>
    %cst_9 = arith.constant 9.99999974E-6 : f32
    %15 = vector.broadcast %cst_9 : f32 to vector<16x1xf32>
    %16 = arith.addf %14, %15 : vector<16x1xf32>
    %17 = math.rsqrt %16 : vector<16x1xf32>
    %18 = vector.broadcast %17 : vector<16x1xf32> to vector<16x128xf32>
    %19 = arith.mulf %9, %18 : vector<16x128xf32>
    %20 = vector.broadcast %2 : vector<1x128xf32> to vector<16x128xf32>
    %21 = arith.mulf %19, %20 : vector<16x128xf32>
    %22 = vector.broadcast %3 : vector<1x128xf32> to vector<16x128xf32>
    %23 = arith.addf %21, %22 : vector<16x128xf32>
    %c0_10 = arith.constant 0 : index
    %c0_11 = arith.constant 0 : index
    %24 = vector.load %arg4[%c0_10, %c0_11] : memref<128x128xf32, #tpu.memory_space<vmem>>, vector<128x128xf32>
    %cst_12 = arith.constant dense<0.000000e+00> : vector<16x128xf32>
    %25 = tpu.matmul %23, %24, %cst_12 {dimension_numbers = #tpu.dot_dimension_numbers<[1], [0], [0], [1], [0, 0, 1, 1], [], []>} : vector<16x128xf32>, vector<128x128xf32>, vector<16x128xf32> -> vector<16x128xf32>
    %c0_13 = arith.constant 0 : index
    %c0_14 = arith.constant 0 : index
    %26 = vector.load %arg5[%c0_13, %c0_14] : memref<128x128xf32, #tpu.memory_space<vmem>>, vector<128x128xf32>
    %cst_15 = arith.constant dense<0.000000e+00> : vector<16x128xf32>
    %27 = tpu.matmul %23, %26, %cst_15 {dimension_numbers = #tpu.dot_dimension_numbers<[1], [0], [0], [1], [0, 0, 1, 1], [], []>} : vector<16x128xf32>, vector<128x128xf32>, vector<16x128xf32> -> vector<16x128xf32>
    %28 = arith.negf %27 : vector<16x128xf32>
    %29 = math.exp %28 : vector<16x128xf32>
    %cst_16 = arith.constant 1.000000e+00 : f32
    %30 = vector.broadcast %cst_16 : f32 to vector<16x128xf32>
    %31 = arith.addf %30, %29 : vector<16x128xf32>
    %32 = arith.divf %30, %31 : vector<16x128xf32>
    %33 = arith.mulf %25, %32 : vector<16x128xf32>
    %cst_17 = arith.constant 0.000000e+00 : f32
    %34 = vector.broadcast %cst_17 : f32 to vector<16x128xf32>
    %c0_18 = arith.constant 0 : index
    %c0_19 = arith.constant 0 : index
    %c0_20 = arith.constant 0 : index
    %35 = vector.load %arg6[%c0_18, %c0_19, %c0_20] : memref<5x16x16xf32, #tpu.memory_space<vmem>>, vector<1x16x16xf32>
    %36 = vector.shape_cast %35 : vector<1x16x16xf32> to vector<16x16xf32>
    %cst_21 = arith.constant dense<0.000000e+00> : vector<16x128xf32>
    %37 = tpu.matmul %36, %33, %cst_21 {dimension_numbers = #tpu.dot_dimension_numbers<[1], [0], [0], [1], [0, 0, 1, 1], [], []>} : vector<16x16xf32>, vector<16x128xf32>, vector<16x128xf32> -> vector<16x128xf32>
    %c0_22 = arith.constant 0 : index
    %c0_23 = arith.constant 0 : index
    %38 = vector.load %arg7[%c0_22, %c0_23] : memref<5x128xf32, #tpu.memory_space<vmem>>, vector<1x128xf32>
    %39 = vector.broadcast %38 : vector<1x128xf32> to vector<16x128xf32>
    %40 = arith.mulf %37, %39 : vector<16x128xf32>
    %41 = arith.addf %34, %40 : vector<16x128xf32>
    %c1 = arith.constant 1 : index
    %c0_24 = arith.constant 0 : index
    %c0_25 = arith.constant 0 : index
    %42 = vector.load %arg6[%c1, %c0_24, %c0_25] : memref<5x16x16xf32, #tpu.memory_space<vmem>>, vector<1x16x16xf32>
    %43 = vector.shape_cast %42 : vector<1x16x16xf32> to vector<16x16xf32>
    %cst_26 = arith.constant dense<0.000000e+00> : vector<16x128xf32>
    %44 = tpu.matmul %43, %33, %cst_26 {dimension_numbers = #tpu.dot_dimension_numbers<[1], [0], [0], [1], [0, 0, 1, 1], [], []>} : vector<16x16xf32>, vector<16x128xf32>, vector<16x128xf32> -> vector<16x128xf32>
    %c1_27 = arith.constant 1 : index
    %c0_28 = arith.constant 0 : index
    %45 = vector.load %arg7[%c1_27, %c0_28] : memref<5x128xf32, #tpu.memory_space<vmem>>, vector<1x128xf32>
    %46 = vector.broadcast %45 : vector<1x128xf32> to vector<16x128xf32>
    %47 = arith.mulf %44, %46 : vector<16x128xf32>
    %48 = arith.addf %41, %47 : vector<16x128xf32>
    %c2 = arith.constant 2 : index
    %c0_29 = arith.constant 0 : index
    %c0_30 = arith.constant 0 : index
    %49 = vector.load %arg6[%c2, %c0_29, %c0_30] : memref<5x16x16xf32, #tpu.memory_space<vmem>>, vector<1x16x16xf32>
    %50 = vector.shape_cast %49 : vector<1x16x16xf32> to vector<16x16xf32>
    %cst_31 = arith.constant dense<0.000000e+00> : vector<16x128xf32>
    %51 = tpu.matmul %50, %33, %cst_31 {dimension_numbers = #tpu.dot_dimension_numbers<[1], [0], [0], [1], [0, 0, 1, 1], [], []>} : vector<16x16xf32>, vector<16x128xf32>, vector<16x128xf32> -> vector<16x128xf32>
    %c2_32 = arith.constant 2 : index
    %c0_33 = arith.constant 0 : index
    %52 = vector.load %arg7[%c2_32, %c0_33] : memref<5x128xf32, #tpu.memory_space<vmem>>, vector<1x128xf32>
    %53 = vector.broadcast %52 : vector<1x128xf32> to vector<16x128xf32>
    %54 = arith.mulf %51, %53 : vector<16x128xf32>
    %55 = arith.addf %48, %54 : vector<16x128xf32>
    %c3 = arith.constant 3 : index
    %c0_34 = arith.constant 0 : index
    %c0_35 = arith.constant 0 : index
    %56 = vector.load %arg6[%c3, %c0_34, %c0_35] : memref<5x16x16xf32, #tpu.memory_space<vmem>>, vector<1x16x16xf32>
    %57 = vector.shape_cast %56 : vector<1x16x16xf32> to vector<16x16xf32>
    %cst_36 = arith.constant dense<0.000000e+00> : vector<16x128xf32>
    %58 = tpu.matmul %57, %33, %cst_36 {dimension_numbers = #tpu.dot_dimension_numbers<[1], [0], [0], [1], [0, 0, 1, 1], [], []>} : vector<16x16xf32>, vector<16x128xf32>, vector<16x128xf32> -> vector<16x128xf32>
    %c3_37 = arith.constant 3 : index
    %c0_38 = arith.constant 0 : index
    %59 = vector.load %arg7[%c3_37, %c0_38] : memref<5x128xf32, #tpu.memory_space<vmem>>, vector<1x128xf32>
    %60 = vector.broadcast %59 : vector<1x128xf32> to vector<16x128xf32>
    %61 = arith.mulf %58, %60 : vector<16x128xf32>
    %62 = arith.addf %55, %61 : vector<16x128xf32>
    %c4 = arith.constant 4 : index
    %c0_39 = arith.constant 0 : index
    %c0_40 = arith.constant 0 : index
    %63 = vector.load %arg6[%c4, %c0_39, %c0_40] : memref<5x16x16xf32, #tpu.memory_space<vmem>>, vector<1x16x16xf32>
    %64 = vector.shape_cast %63 : vector<1x16x16xf32> to vector<16x16xf32>
    %cst_41 = arith.constant dense<0.000000e+00> : vector<16x128xf32>
    %65 = tpu.matmul %64, %33, %cst_41 {dimension_numbers = #tpu.dot_dimension_numbers<[1], [0], [0], [1], [0, 0, 1, 1], [], []>} : vector<16x16xf32>, vector<16x128xf32>, vector<16x128xf32> -> vector<16x128xf32>
    %c4_42 = arith.constant 4 : index
    %c0_43 = arith.constant 0 : index
    %66 = vector.load %arg7[%c4_42, %c0_43] : memref<5x128xf32, #tpu.memory_space<vmem>>, vector<1x128xf32>
    %67 = vector.broadcast %66 : vector<1x128xf32> to vector<16x128xf32>
    %68 = arith.mulf %65, %67 : vector<16x128xf32>
    %69 = arith.addf %62, %68 : vector<16x128xf32>
    %c0_44 = arith.constant 0 : index
    %c0_45 = arith.constant 0 : index
    %70 = vector.load %arg8[%c0_44, %c0_45] : memref<1x128xf32, #tpu.memory_space<vmem>>, vector<1x128xf32>
    %71 = vector.broadcast %70 : vector<1x128xf32> to vector<16x128xf32>
    %72 = arith.mulf %69, %71 : vector<16x128xf32>
    %c0_46 = arith.constant 0 : index
    %c0_47 = arith.constant 0 : index
    %73 = vector.load %arg9[%c0_46, %c0_47] : memref<1x128xf32, #tpu.memory_space<vmem>>, vector<1x128xf32>
    %74 = vector.broadcast %73 : vector<1x128xf32> to vector<16x128xf32>
    %75 = arith.addf %72, %74 : vector<16x128xf32>
    %76 = arith.negf %75 : vector<16x128xf32>
    %77 = math.exp %76 : vector<16x128xf32>
    %cst_48 = arith.constant 1.000000e+00 : f32
    %78 = vector.broadcast %cst_48 : f32 to vector<16x128xf32>
    %79 = arith.addf %78, %77 : vector<16x128xf32>
    %80 = arith.divf %78, %79 : vector<16x128xf32>
    %81 = arith.mulf %75, %80 : vector<16x128xf32>
    %c0_49 = arith.constant 0 : index
    %c0_50 = arith.constant 0 : index
    %82 = vector.load %arg10[%c0_49, %c0_50] : memref<128x128xf32, #tpu.memory_space<vmem>>, vector<128x128xf32>
    %cst_51 = arith.constant dense<0.000000e+00> : vector<16x128xf32>
    %83 = tpu.matmul %81, %82, %cst_51 {dimension_numbers = #tpu.dot_dimension_numbers<[1], [0], [0], [1], [0, 0, 1, 1], [], []>} : vector<16x128xf32>, vector<128x128xf32>, vector<16x128xf32> -> vector<16x128xf32>
    %84 = arith.addf %1, %83 : vector<16x128xf32>
    %c0_52 = arith.constant 0 : index
    %c0_53 = arith.constant 0 : index
    %c0_54 = arith.constant 0 : index
    %85 = vector.load %arg11[%c0_52, %c0_53, %c0_54] : memref<1x16x128xf32, #tpu.memory_space<vmem>>, vector<1x16x128xf32>
    %86 = vector.shape_cast %85 : vector<1x16x128xf32> to vector<16x128xf32>
    %87 = vector.shape_cast %84 : vector<16x128xf32> to vector<1x16x128xf32>
    tpu.vector_store %arg11[%c0_52, %c0_53, %c0_54], %87 {strides = array<i32>} : memref<1x16x128xf32, #tpu.memory_space<vmem>>, vector<1x16x128xf32>,
    return
  }
  func.func @transform_0(%arg0: i32) -> (i32, i32, i32) {
    %c0_i32 = arith.constant 0 : i32
    %c0_i32_0 = arith.constant 0 : i32
    %c0_i32_1 = arith.constant 0 : i32
    return %arg0, %c0_i32, %c0_i32_0 : i32, i32, i32
  }
  func.func @transform_1(%arg0: i32) -> (i32, i32) {
    %c0_i32 = arith.constant 0 : i32
    %c0_i32_0 = arith.constant 0 : i32
    %c0_i32_1 = arith.constant 0 : i32
    return %c0_i32, %c0_i32_0 : i32, i32
  }
  func.func @transform_2(%arg0: i32) -> (i32, i32) {
    %c0_i32 = arith.constant 0 : i32
    %c0_i32_0 = arith.constant 0 : i32
    %c0_i32_1 = arith.constant 0 : i32
    return %c0_i32, %c0_i32_0 : i32, i32
  }
  func.func @transform_3(%arg0: i32) -> (i32, i32) {
    %c0_i32 = arith.constant 0 : i32
    %c0_i32_0 = arith.constant 0 : i32
    %c0_i32_1 = arith.constant 0 : i32
    return %c0_i32, %c0_i32_0 : i32, i32
  }
  func.func @transform_4(%arg0: i32) -> (i32, i32) {
    %c0_i32 = arith.constant 0 : i32
    %c0_i32_0 = arith.constant 0 : i32
    %c0_i32_1 = arith.constant 0 : i32
    return %c0_i32, %c0_i32_0 : i32, i32
  }
  func.func @transform_5(%arg0: i32) -> (i32, i32, i32) {
    %c0_i32 = arith.constant 0 : i32
    %c0_i32_0 = arith.constant 0 : i32
    %c0_i32_1 = arith.constant 0 : i32
    %c0_i32_2 = arith.constant 0 : i32
    return %c0_i32, %c0_i32_0, %c0_i32_1 : i32, i32, i32
  }
  func.func @transform_6(%arg0: i32) -> (i32, i32) {
    %c0_i32 = arith.constant 0 : i32
    %c0_i32_0 = arith.constant 0 : i32
    %c0_i32_1 = arith.constant 0 : i32
    return %c0_i32, %c0_i32_0 : i32, i32
  }
  func.func @transform_7(%arg0: i32) -> (i32, i32) {
    %c0_i32 = arith.constant 0 : i32
    %c0_i32_0 = arith.constant 0 : i32
    %c0_i32_1 = arith.constant 0 : i32
    return %c0_i32, %c0_i32_0 : i32, i32
  }
  func.func @transform_8(%arg0: i32) -> (i32, i32) {
    %c0_i32 = arith.constant 0 : i32
    %c0_i32_0 = arith.constant 0 : i32
    %c0_i32_1 = arith.constant 0 : i32
    return %c0_i32, %c0_i32_0 : i32, i32
  }
  func.func @transform_9(%arg0: i32) -> (i32, i32) {
    %c0_i32 = arith.constant 0 : i32
    %c0_i32_0 = arith.constant 0 : i32
    %c0_i32_1 = arith.constant 0 : i32
    return %c0_i32, %c0_i32_0 : i32, i32
  }
  func.func @transform_10(%arg0: i32) -> (i32, i32, i32) {
    %c0_i32 = arith.constant 0 : i32
    %c0_i32_0 = arith.constant 0 : i32
    %c0_i32_1 = arith.constant 0 : i32
    return %arg0, %c0_i32, %c0_i32_0 : i32, i32, i32
  }
}

module attributes {stable_mosaic.version = 11 : i64} {
  func.func @_layernorm_kernel(%arg0: i32, %arg1: memref<32x128xf32, #tpu.memory_space<vmem>>, %arg2: memref<1x128xf32, #tpu.memory_space<vmem>>, %arg3: memref<1x128xf32, #tpu.memory_space<vmem>>, %arg4: memref<32x128xf32, #tpu.memory_space<vmem>>) attributes {dimension_semantics = [#tpu.dimension_semantics<parallel>], iteration_bounds = array<i64: 1>, scalar_prefetch = 0 : i64, scratch_operands = 0 : i64, tpu.core_type = #tpu.core_type<tc>, window_params = [{transform_indices = @transform_0, window_bounds = array<i64: 32, 128>}, {pipeline_mode = #tpu.pipeline_mode<synchronous>, transform_indices = @transform_1, window_bounds = array<i64: 1, 128>}, {pipeline_mode = #tpu.pipeline_mode<synchronous>, transform_indices = @transform_2, window_bounds = array<i64: 1, 128>}, {transform_indices = @transform_3, window_bounds = array<i64: 32, 128>}]} {
    %c0 = arith.constant 0 : index
    %c0_0 = arith.constant 0 : index
    %0 = vector.load %arg1[%c0, %c0_0] : memref<32x128xf32, #tpu.memory_space<vmem>>, vector<32x128xf32>
    %c0_1 = arith.constant 0 : index
    %c0_2 = arith.constant 0 : index
    %1 = vector.load %arg2[%c0_1, %c0_2] : memref<1x128xf32, #tpu.memory_space<vmem>>, vector<1x128xf32>
    %c0_3 = arith.constant 0 : index
    %c0_4 = arith.constant 0 : index
    %2 = vector.load %arg3[%c0_3, %c0_4] : memref<1x128xf32, #tpu.memory_space<vmem>>, vector<1x128xf32>
    %cst = arith.constant dense<0.000000e+00> : vector<32xf32>
    %3 = vector.multi_reduction <add>, %0, %cst [1] : vector<32x128xf32> to vector<32xf32>
    %4 = vector.shape_cast %3 : vector<32xf32> to vector<32x1xf32>
    %cst_5 = arith.constant 1.280000e+02 : f32
    %5 = vector.broadcast %cst_5 : f32 to vector<32x1xf32>
    %6 = arith.divf %4, %5 : vector<32x1xf32>
    %7 = vector.broadcast %6 : vector<32x1xf32> to vector<32x128xf32>
    %8 = arith.subf %0, %7 : vector<32x128xf32>
    %9 = arith.mulf %8, %8 : vector<32x128xf32>
    %cst_6 = arith.constant dense<0.000000e+00> : vector<32xf32>
    %10 = vector.multi_reduction <add>, %9, %cst_6 [1] : vector<32x128xf32> to vector<32xf32>
    %11 = vector.shape_cast %10 : vector<32xf32> to vector<32x1xf32>
    %cst_7 = arith.constant 1.280000e+02 : f32
    %12 = vector.broadcast %cst_7 : f32 to vector<32x1xf32>
    %13 = arith.divf %11, %12 : vector<32x1xf32>
    %cst_8 = arith.constant 9.99999974E-6 : f32
    %14 = vector.broadcast %cst_8 : f32 to vector<32x1xf32>
    %15 = arith.addf %13, %14 : vector<32x1xf32>
    %16 = math.rsqrt %15 : vector<32x1xf32>
    %17 = vector.broadcast %16 : vector<32x1xf32> to vector<32x128xf32>
    %18 = arith.mulf %8, %17 : vector<32x128xf32>
    %19 = vector.broadcast %1 : vector<1x128xf32> to vector<32x128xf32>
    %20 = arith.mulf %18, %19 : vector<32x128xf32>
    %21 = vector.broadcast %2 : vector<1x128xf32> to vector<32x128xf32>
    %22 = arith.addf %20, %21 : vector<32x128xf32>
    %c0_9 = arith.constant 0 : index
    %c0_10 = arith.constant 0 : index
    %23 = vector.load %arg4[%c0_9, %c0_10] : memref<32x128xf32, #tpu.memory_space<vmem>>, vector<32x128xf32>
    tpu.vector_store %arg4[%c0_9, %c0_10], %22 {strides = array<i32>} : memref<32x128xf32, #tpu.memory_space<vmem>>, vector<32x128xf32>,
    return
  }
  func.func @transform_0(%arg0: i32) -> (i32, i32) {
    %c0_i32 = arith.constant 0 : i32
    %c0_i32_0 = arith.constant 0 : i32
    return %arg0, %c0_i32 : i32, i32
  }
  func.func @transform_1(%arg0: i32) -> (i32, i32) {
    %c0_i32 = arith.constant 0 : i32
    %c0_i32_0 = arith.constant 0 : i32
    %c0_i32_1 = arith.constant 0 : i32
    return %c0_i32, %c0_i32_0 : i32, i32
  }
  func.func @transform_2(%arg0: i32) -> (i32, i32) {
    %c0_i32 = arith.constant 0 : i32
    %c0_i32_0 = arith.constant 0 : i32
    %c0_i32_1 = arith.constant 0 : i32
    return %c0_i32, %c0_i32_0 : i32, i32
  }
  func.func @transform_3(%arg0: i32) -> (i32, i32) {
    %c0_i32 = arith.constant 0 : i32
    %c0_i32_0 = arith.constant 0 : i32
    return %arg0, %c0_i32 : i32, i32
  }
}

</mosaic_0001>

<bundles_post_ra>
// kernel: conformer_encoder_forward.14
= control target key start
LH: loop header
LB: loop body
LE: loop exit
PB: predicated region body
PF: predicated region fallthrough
CT: control target
= control target key end

     0   :  { %s153_s0 = inlined_call_operand.vmem [shape: f32[32,128], index: 0, kind: input, shape index: {}]   ;;  %s154_s1 = inlined_call_operand.vmem [shape: f32[1,128], index: 1, kind: input, shape index: {}]   ;;  %s155_s2 = inlined_call_operand.vmem [shape: f32[1,128], index: 2, kind: input, shape index: {}]   ;;  %s156_s3 = inlined_call_operand.vmem [shape: f32[32,128], index: 3, kind: output, shape index: {}]  }
   0x1   :  { %v14_v0 = vld [vmem:[%s153_s0] sm:$0xff]  ;;  %v16_v1 = vld [vmem:[%s153_s0 + $0x10] sm:$0xff]  ;;  %v15_v2 = vld [vmem:[%s153_s0 + $0x8] sm:$0xff] }
   0x2   :  { %20 = vadd.xlane.f32.xlu0 %v14_v0  ;;  %24 = vadd.xlane.f32.xlu1 %v16_v1  ;;  %v17_v3 = vld [vmem:[%s153_s0 + $0x18] sm:$0xff]  ;;  %v93_v33 = vld [vmem:[%s154_s1] ss:$0 sm:$0xff] }
   0x3   :  { %v94_v35 = vld [vmem:[%s155_s2] ss:$0 sm:$0xff] }
   0x6   :  { %22 = vadd.xlane.f32.xlu0 %v15_v2  ;;  %26 = vadd.xlane.f32.xlu1 %v17_v3 }
  0x8b   :  { %v21_v4 = vpop.xlane.xlu0 %20  ;;  %v25_v5 = vpop.xlane.xlu1 %24 }
  0x8c   :  { %v29_v6 = vmul.f32 0.0078125, %v21_v4  ;;  %v31_v7 = vmul.f32 0.0078125, %v25_v5 }
  0x8e   :  { %v33_v8 = vsub.f32 %v14_v0, %v29_v6  ;;  %v35_v9 = vsub.f32 %v16_v1, %v31_v7 }
  0x8f   :  { %v23_v10 = vpop.xlane.xlu0 %22  ;;  %v27_v11 = vpop.xlane.xlu1 %26 }
  0x90   :  { %v30_v12 = vmul.f32 0.0078125, %v23_v10  ;;  %v37_v13 = vmul.f32 %v33_v8, %v33_v8  ;;  %v32_v14 = vmul.f32 0.0078125, %v27_v11  ;;  %v39_v17 = vmul.f32 %v35_v9, %v35_v9 }
  0x92   :  { %v34_v15 = vsub.f32 %v15_v2, %v30_v12  ;;  %41 = vadd.xlane.f32.xlu0 %v37_v13  ;;  %v36_v16 = vsub.f32 %v17_v3, %v32_v14 }
  0x94   :  { %v38_v18 = vmul.f32 %v34_v15, %v34_v15  ;;  %v40_v19 = vmul.f32 %v36_v16, %v36_v16 }
  0x96   :  { %45 = vadd.xlane.f32.xlu0 %v39_v17  ;;  %43 = vadd.xlane.f32.xlu1 %v38_v18 }
  0x9a   :  { %47 = vadd.xlane.f32.xlu1 %v40_v19 }
 0x11b   :  { %v42_v20 = vpop.xlane.xlu0 %41 }
 0x11c   :  { %v49_v21 = vmul.f32 0.0078125, %v42_v20 }
 0x11e   :  { %v53_v22 = vadd.f32 1e-05, %v49_v21 }
 0x11f   :  { %v44_v23 = vpop.xlane.xlu1 %43  ;;  %v46_v24 = vpop.xlane.xlu0 %45 }
 0x120   :  { %95 = vrsqrt.f32 %v53_v22  ;;  %v50_v25 = vmul.f32 0.0078125, %v44_v23  ;;  %v51_v26 = vmul.f32 0.0078125, %v46_v24 }
 0x122   :  { %v54_v27 = vadd.f32 1e-05, %v50_v25  ;;  %v55_v28 = vadd.f32 1e-05, %v51_v26 }
 0x123   :  { %v48_v29 = vpop.xlane.xlu1 %47 }
 0x124   :  { %97 = vrsqrt.f32 %v54_v27  ;;  %v52_v30 = vmul.f32 0.0078125, %v48_v29 }
 0x125   :  { %99 = vrsqrt.f32 %v55_v28 }
 0x126   :  { %v56_v31 = vadd.f32 1e-05, %v52_v30 }
 0x128   :  { %101 = vrsqrt.f32 %v56_v31 }
 0x12d   :  { %v96_v32 = vpop.eup %95 }
 0x12e   :  { %v61_v34 = vmul.f32 %v96_v32, %v33_v8 }
 0x130   :  { %v71_v36 = vmul.f32 %v93_v33, %v61_v34 }
 0x131   :  { %v98_v37 = vpop.eup %97 }
 0x132   :  { %v100_v38 = vpop.eup %99  ;;  %v81_v39 = vadd.f32 %v94_v35, %v71_v36  ;;  %v62_v40 = vmul.f32 %v98_v37, %v34_v15 }
 0x133   :  { %v63_v41 = vmul.f32 %v100_v38, %v35_v9 }
 0x134   :  { %85 = vst [vmem:[%s156_s3] sm:$0xff] %v81_v39  ;;  %v72_v42 = vmul.f32 %v93_v33, %v62_v40 }
 0x135   :  { %v102_v43 = vpop.eup %101  ;;  %v73_v44 = vmul.f32 %v93_v33, %v63_v41 }
 0x136   :  { %v82_v45 = vadd.f32 %v94_v35, %v72_v42  ;;  %v64_v46 = vmul.f32 %v102_v43, %v36_v16 }
 0x137   :  { %v83_v47 = vadd.f32 %v94_v35, %v73_v44 }
 0x138   :  { %86 = vst [vmem:[%s156_s3 + $0x8] sm:$0xff] %v82_v45  ;;  %v74_v48 = vmul.f32 %v93_v33, %v64_v46 }
 0x139   :  { %87 = vst [vmem:[%s156_s3 + $0x10] sm:$0xff] %v83_v47 }
 0x13a   :  { %v84_v49 = vadd.f32 %v94_v35, %v74_v48 }
 0x13c   :  { %88 = vst [vmem:[%s156_s3 + $0x18] sm:$0xff] %v84_v49 }

// kernel: conformer_encoder_forward.13
= control target key start
LH: loop header
LB: loop body
LE: loop exit
PB: predicated region body
PF: predicated region fallthrough
CT: control target
= control target key end

     0   :  { %v522_v44 = vmov 0.0   ;;  %s831_s0 = inlined_call_operand.vmem [shape: f32[32,128], index: 0, kind: input, shape index: {}]   ;;  %s832_s3 = inlined_call_operand.vmem [shape: f32[128,256], index: 3, kind: input, shape index: {}]   ;;  %s833_s1 = inlined_call_operand.vmem [shape: f32[1,128], index: 1, kind: input, shape index: {}]   ;;  %s834_s2 = inlined_call_operand.vmem [shape: f32[1,128], index: 2, kind: input, shape index: {}]   ;;  %s835_s5 = inlined_call_operand.vmem [shape: f32[256,128], index: 5, kind: input, shape index: {}]   ;;  %s836_s4 = inlined_call_operand.vmem [shape: f32[1,256], index: 4, kind: input, shape index: {}]   ;;  %s837_s6 = inlined_call_operand.vmem [shape: f32[1,128], index: 6, kind: input, shape index: {}]   ;;  %s838_s7 = inlined_call_operand.vmem [shape: f32[32,128], index: 7, kind: output, shape index: {}]  }
   0x1   :  { %v566_v0 = vld [vmem:[%s831_s0] sm:$0xff]  ;;  %v571_v1 = vld [vmem:[%s831_s0 + $0x10] sm:$0xff]  ;;  %v578_v2 = vld [vmem:[%s831_s0 + $0x8] sm:$0xff]  ;;  %205 = vmatprep.mubr.f32.mxu0 %v522_v44 }
   0x2   :  { %32 = vadd.xlane.f32.xlu0 %v566_v0  ;;  %36 = vadd.xlane.f32.xlu1 %v571_v1  ;;  %v583_v3 = vld [vmem:[%s831_s0 + $0x18] sm:$0xff]  ;;  %v127_v5 = vld [vmem:[%s832_s3 + $0xf0] sm:$0xff]  ;;  %v126_v6 = vld [vmem:[%s832_s3 + $0xe8] sm:$0xff] }
   0x3   :  { %v128_v4 = vld [vmem:[%s832_s3 + $0xf8] sm:$0xff]  ;;  %v125_v7 = vld [vmem:[%s832_s3 + $0xe0] sm:$0xff]  ;;  %v123_v9 = vld [vmem:[%s832_s3 + $0xd0] sm:$0xff] }
   0x4   :  { %141 = vmatprep.subr.mxu0 %v128_v4  ;;  %v124_v8 = vld [vmem:[%s832_s3 + $0xd8] sm:$0xff]  ;;  %v122_v10 = vld [vmem:[%s832_s3 + $0xc8] sm:$0xff]  ;;  %v121_v11 = vld [vmem:[%s832_s3 + $0xc0] sm:$0xff] }
   0x5   :  { %142 = vmatpush1.msra.mxu0 %v127_v5  ;;  %v120_v28 = vld [vmem:[%s832_s3 + $0xb8] sm:$0xff]  ;;  %v119_v29 = vld [vmem:[%s832_s3 + $0xb0] sm:$0xff]  ;;  %v118_v30 = vld [vmem:[%s832_s3 + $0xa8] sm:$0xff] }
   0x6   :  { %34 = vadd.xlane.f32.xlu0 %v578_v2  ;;  %38 = vadd.xlane.f32.xlu1 %v583_v3  ;;  %v117_v31 = vld [vmem:[%s832_s3 + $0xa0] sm:$0xff]  ;;  %v116_v32 = vld [vmem:[%s832_s3 + $0x98] sm:$0xff]  ;;  %v115_v33 = vld [vmem:[%s832_s3 + $0x90] sm:$0xff] }
   0x7   :  { %143 = vmatprep.subr.mxu0 %v126_v6  ;;  %v114_v34 = vld [vmem:[%s832_s3 + $0x88] sm:$0xff]  ;;  %v113_v35 = vld [vmem:[%s832_s3 + $0x80] sm:$0xff]  ;;  %v112_v36 = vld [vmem:[%s832_s3 + $0x78] sm:$0xff] }
   0x8   :  { %144 = vmatpush1.msra.mxu0 %v125_v7  ;;  %v111_v37 = vld [vmem:[%s832_s3 + $0x70] sm:$0xff]  ;;  %v110_v38 = vld [vmem:[%s832_s3 + $0x68] sm:$0xff]  ;;  %v109_v39 = vld [vmem:[%s832_s3 + $0x60] sm:$0xff] }
   0x9   :  { %145 = vmatprep.subr.mxu0 %v124_v8  ;;  %v108_v40 = vld [vmem:[%s832_s3 + $0x58] sm:$0xff]  ;;  %v107_v41 = vld [vmem:[%s832_s3 + $0x50] sm:$0xff]  ;;  %v106_v42 = vld [vmem:[%s832_s3 + $0x48] sm:$0xff] }
   0xa   :  { %146 = vmatpush1.msra.mxu0 %v123_v9  ;;  %v105_v43 = vld [vmem:[%s832_s3 + $0x40] sm:$0xff]  ;;  %v104_v45 = vld [vmem:[%s832_s3 + $0x38] sm:$0xff]  ;;  %v103_v46 = vld [vmem:[%s832_s3 + $0x30] sm:$0xff] }
   0xb   :  { %147 = vmatprep.subr.mxu0 %v122_v10  ;;  %v102_v47 = vld [vmem:[%s832_s3 + $0x28] sm:$0xff]  ;;  %v101_v48 = vld [vmem:[%s832_s3 + $0x20] sm:$0xff]  ;;  %v100_v49 = vld [vmem:[%s832_s3 + $0x18] sm:$0xff] }
   0xc   :  { %148 = vmatpush1.msra.mxu0 %v121_v11  ;;  %v99_v50 = vld [vmem:[%s832_s3 + $0x10] sm:$0xff]  ;;  %v98_v51 = vld [vmem:[%s832_s3 + $0x8] sm:$0xff]  ;;  %v97_v52 = vld [vmem:[%s832_s3] sm:$0xff] }
   0xd   :  { %149 = vmatprep.subr.mxu0 %v120_v28  ;;  %v426_v6 = vld [vmem:[%s833_s1] ss:$0 sm:$0xff]  ;;  %v299_v28 = vld [vmem:[%s835_s5 + $0x68] sm:$0xff] }
   0xe   :  { %150 = vmatpush1.msra.mxu0 %v119_v29  ;;  %v427_v8 = vld [vmem:[%s834_s2] ss:$0 sm:$0xff] }
   0xf   :  { %151 = vmatprep.subr.mxu0 %v118_v30  ;;  %v314_v29 = vld [vmem:[%s835_s5 + $0xe0] sm:$0xff] }
  0x10   :  { %152 = vmatpush1.msra.mxu0 %v117_v31  ;;  %v298_v30 = vld [vmem:[%s835_s5 + $0x60] sm:$0xff]  ;;  %v313_v31 = vld [vmem:[%s835_s5 + $0xd8] sm:$0xff] }
  0x11   :  { %153 = vmatprep.subr.mxu0 %v116_v32  ;;  %v297_v32 = vld [vmem:[%s835_s5 + $0x58] sm:$0xff] }
  0x12   :  { %154 = vmatpush1.msra.mxu0 %v115_v33  ;;  %v312_v33 = vld [vmem:[%s835_s5 + $0xd0] sm:$0xff] }
  0x13   :  { %155 = vmatprep.subr.mxu0 %v114_v34  ;;  %v296_v34 = vld [vmem:[%s835_s5 + $0x50] sm:$0xff] }
  0x14   :  { %156 = vmatpush1.msra.mxu0 %v113_v35  ;;  %v311_v35 = vld [vmem:[%s835_s5 + $0xc8] sm:$0xff] }
  0x15   :  { %157 = vmatprep.subr.mxu0 %v112_v36  ;;  %v295_v36 = vld [vmem:[%s835_s5 + $0x48] sm:$0xff] }
  0x16   :  { %158 = vmatpush1.msra.mxu0 %v111_v37  ;;  %v310_v37 = vld [vmem:[%s835_s5 + $0xc0] sm:$0xff] }
  0x17   :  { %159 = vmatprep.subr.mxu0 %v110_v38  ;;  %v294_v38 = vld [vmem:[%s835_s5 + $0x40] sm:$0xff] }
  0x18   :  { %160 = vmatpush1.msra.mxu0 %v109_v39  ;;  %v309_v39 = vld [vmem:[%s835_s5 + $0xb8] sm:$0xff] }
  0x19   :  { %161 = vmatprep.subr.mxu0 %v108_v40  ;;  %v293_v40 = vld [vmem:[%s835_s5 + $0x38] sm:$0xff] }
  0x1a   :  { %162 = vmatpush1.msra.mxu0 %v107_v41  ;;  %v308_v41 = vld [vmem:[%s835_s5 + $0xb0] sm:$0xff] }
  0x1b   :  { %163 = vmatprep.subr.mxu0 %v106_v42  ;;  %v292_v42 = vld [vmem:[%s835_s5 + $0x30] sm:$0xff] }
  0x1c   :  { %164 = vmatpush1.msra.mxu0 %v105_v43  ;;  %v307_v43 = vld [vmem:[%s835_s5 + $0xa8] sm:$0xff] }
  0x1d   :  { %165 = vmatprep.subr.mxu0 %v104_v45  ;;  %v306_v45 = vld [vmem:[%s835_s5 + $0xa0] sm:$0xff] }
  0x1e   :  { %166 = vmatpush1.msra.mxu0 %v103_v46  ;;  %v290_v46 = vld [vmem:[%s835_s5 + $0x20] sm:$0xff] }
  0x1f   :  { %167 = vmatprep.subr.mxu0 %v102_v47  ;;  %v305_v47 = vld [vmem:[%s835_s5 + $0x98] sm:$0xff] }
  0x20   :  { %168 = vmatpush1.msra.mxu0 %v101_v48  ;;  %v289_v48 = vld [vmem:[%s835_s5 + $0x18] sm:$0xff] }
  0x21   :  { %169 = vmatprep.subr.mxu0 %v100_v49  ;;  %v304_v49 = vld [vmem:[%s835_s5 + $0x90] sm:$0xff] }
  0x22   :  { %170 = vmatpush1.msra.mxu0 %v99_v50  ;;  %v288_v50 = vld [vmem:[%s835_s5 + $0x10] sm:$0xff] }
  0x23   :  { %171 = vmatprep.subr.mxu0 %v98_v51  ;;  %v303_v51 = vld [vmem:[%s835_s5 + $0x88] sm:$0xff] }
  0x24   :  { %172 = vmatpush1.msra.mxu0 %v97_v52  ;;  %v287_v52 = vld [vmem:[%s835_s5 + $0x8] sm:$0xff] }
  0x8b   :  { %v33_v12 = vpop.xlane.xlu0 %32  ;;  %v37_v13 = vpop.xlane.xlu1 %36 }
  0x8c   :  { %v41_v14 = vmul.f32 0.0078125, %v33_v12  ;;  %v43_v15 = vmul.f32 0.0078125, %v37_v13 }
  0x8e   :  { %v612_v16 = vsub.f32 %v566_v0, %v41_v14  ;;  %v615_v17 = vsub.f32 %v571_v1, %v43_v15 }
  0x8f   :  { %v35_v18 = vpop.xlane.xlu0 %34  ;;  %v39_v19 = vpop.xlane.xlu1 %38 }
  0x90   :  { %v42_v20 = vmul.f32 0.0078125, %v35_v18  ;;  %v49_v21 = vmul.f32 %v612_v16, %v612_v16  ;;  %v44_v22 = vmul.f32 0.0078125, %v39_v19  ;;  %v51_v25 = vmul.f32 %v615_v17, %v615_v17 }
  0x92   :  { %v620_v23 = vsub.f32 %v578_v2, %v42_v20  ;;  %53 = vadd.xlane.f32.xlu0 %v49_v21  ;;  %v623_v24 = vsub.f32 %v583_v3, %v44_v22 }
  0x94   :  { %v50_v26 = vmul.f32 %v620_v23, %v620_v23  ;;  %v52_v27 = vmul.f32 %v623_v24, %v623_v24 }
  0x96   :  { %57 = vadd.xlane.f32.xlu0 %v51_v25  ;;  %55 = vadd.xlane.f32.xlu1 %v50_v26  ;;  %v300_v26 = vld [vmem:[%s835_s5 + $0x70] sm:$0xff] }
  0x9a   :  { %59 = vadd.xlane.f32.xlu1 %v52_v27  ;;  %v315_v27 = vld [vmem:[%s835_s5 + $0xe8] sm:$0xff] }
 0x11b   :  { %v54_v53 = vpop.xlane.xlu0 %53 }
 0x11c   :  { %v61_v54 = vmul.f32 0.0078125, %v54_v53  ;;  %v302_v53 = vld [vmem:[%s835_s5 + $0x80] sm:$0xff] }
 0x11e   :  { %v65_v55 = vadd.f32 1e-05, %v61_v54  ;;  %v286_v54 = vld [vmem:[%s835_s5] sm:$0xff] }
 0x11f   :  { %v56_v56 = vpop.xlane.xlu1 %55  ;;  %v58_v57 = vpop.xlane.xlu0 %57 }
 0x120   :  { %482 = vrsqrt.f32 %v65_v55  ;;  %v62_v58 = vmul.f32 0.0078125, %v56_v56  ;;  %v63_v59 = vmul.f32 0.0078125, %v58_v57  ;;  %v131_v55 = vlaneseq }
 0x122   :  { %v66_v60 = vadd.f32 1e-05, %v62_v58  ;;  %v67_v61 = vadd.f32 1e-05, %v63_v59  ;;  %v132_v56 = vshrl.u32 %v131_v55, 7 }
 0x123   :  { %v60_v62 = vpop.xlane.xlu1 %59  ;;  %v129_v58 = vld [vmem:[%s836_s4] sm:$0x3] }
 0x124   :  { %484 = vrsqrt.f32 %v66_v60  ;;  %v64_v63 = vmul.f32 0.0078125, %v60_v62  ;;  %v133_v57 = vsub.s32 0, %v132_v56  ;;  %v137_v59 = vsub.s32 1, %v132_v56 }
 0x125   :  { %486 = vrsqrt.f32 %v67_v61 }
 0x126   :  { %v68_v4 = vadd.f32 1e-05, %v64_v63  ;;  %v134_v60 = vrot.slane %v129_v58, %v133_v57  ;;  %v138_v61 = vrot.slane %v129_v58, %v137_v59  ;;  %v436_v59 = vld [vmem:[%s837_s6] ss:$0 sm:$0xff] }
 0x128   :  { %488 = vrsqrt.f32 %v68_v4 }
 0x12d   :  { %v483_v5 = vpop.eup %482 }
 0x12e   :  { %v73_v7 = vmul.f32 %v483_v5, %v612_v16 }
 0x130   :  { %v83_v9 = vmul.f32 %v426_v6, %v73_v7 }
 0x131   :  { %v485_v10 = vpop.eup %484 }
 0x132   :  { %v487_v11 = vpop.eup %486  ;;  %v93_v12 = vadd.f32 %v427_v8, %v83_v9  ;;  %v74_v13 = vmul.f32 %v485_v10, %v620_v23  ;;  %v301_v23 = vld [vmem:[%s835_s5 + $0x78] sm:$0xff] }
 0x133   :  { %v75_v14 = vmul.f32 %v487_v11, %v615_v17  ;;  %v317_v17 = vld [vmem:[%s835_s5 + $0xf8] sm:$0xff] }
 0x134   :  { %206 = vmatmul.mubr.f32.vlgmr.msra.gmra.mxu0 %v93_v12  ;;  %v84_v15 = vmul.f32 %v426_v6, %v74_v13  ;;  %437 = vmatprep.subr.mxu1 %v317_v17 }
 0x135   :  { %v489_v18 = vpop.eup %488  ;;  %211 = vmatprep.mubr.f32.mxu0 %v522_v44  ;;  %v85_v20 = vmul.f32 %v426_v6, %v75_v14  ;;  %438 = vmatpush3.msra.mxu1 %v301_v23 }
 0x136   :  { %v94_v19 = vadd.f32 %v427_v8, %v84_v15  ;;  %v76_v16 = vmul.f32 %v489_v18, %v623_v24  ;;  %v316_v24 = vld [vmem:[%s835_s5 + $0xf0] sm:$0xff] }
 0x137   :  { %v95_v21 = vadd.f32 %v427_v8, %v85_v20  ;;  %439 = vmatprep.subr.mxu1 %v316_v24 }
 0x138   :  { %212 = vmatmul.mubr.f32.gmra.mxu0 %v94_v19  ;;  %v86_v22 = vmul.f32 %v426_v6, %v76_v16  ;;  %440 = vmatpush3.msra.mxu1 %v300_v26 }
 0x139   :  { %217 = vmatprep.mubr.f32.mxu0 %v522_v44  ;;  %441 = vmatprep.subr.mxu1 %v315_v27 }
 0x13a   :  { %v96_v25 = vadd.f32 %v427_v8, %v86_v22  ;;  %442 = vmatpush3.msra.mxu1 %v299_v28 }
 0x13b   :  { %443 = vmatprep.subr.mxu1 %v314_v29 }
 0x13c   :  { %218 = vmatmul.mubr.f32.gmra.mxu0 %v95_v21  ;;  %444 = vmatpush3.msra.mxu1 %v298_v30 }
 0x13d   :  { %223 = vmatprep.mubr.f32.mxu0 %v522_v44  ;;  %445 = vmatprep.subr.mxu1 %v313_v31  ;;  %v291_v44 = vld [vmem:[%s835_s5 + $0x28] sm:$0xff] }
 0x13e   :  { %446 = vmatpush3.msra.mxu1 %v297_v32 }
 0x13f   :  { %447 = vmatprep.subr.mxu1 %v312_v33 }
 0x140   :  { %224 = vmatmul.mubr.f32.gmra.mxu0 %v96_v25  ;;  %448 = vmatpush3.msra.mxu1 %v296_v34 }
 0x141   :  { %449 = vmatprep.subr.mxu1 %v311_v35 }
 0x142   :  { %450 = vmatpush3.msra.mxu1 %v295_v36 }
 0x143   :  { %451 = vmatprep.subr.mxu1 %v310_v37 }
 0x144   :  { %452 = vmatpush3.msra.mxu1 %v294_v38 }
 0x145   :  { %453 = vmatprep.subr.mxu1 %v309_v39 }
 0x146   :  { %454 = vmatpush3.msra.mxu1 %v293_v40 }
 0x147   :  { %455 = vmatprep.subr.mxu1 %v308_v41 }
 0x148   :  { %456 = vmatpush3.msra.mxu1 %v292_v42 }
 0x149   :  { %457 = vmatprep.subr.mxu1 %v307_v43 }
 0x14a   :  { %458 = vmatpush3.msra.mxu1 %v291_v44 }
 0x14b   :  { %459 = vmatprep.subr.mxu1 %v306_v45 }
 0x14c   :  { %460 = vmatpush3.msra.mxu1 %v290_v46 }
 0x14d   :  { %461 = vmatprep.subr.mxu1 %v305_v47 }
 0x14e   :  { %462 = vmatpush3.msra.mxu1 %v289_v48 }
 0x14f   :  { %463 = vmatprep.subr.mxu1 %v304_v49 }
 0x150   :  { %464 = vmatpush3.msra.mxu1 %v288_v50 }
 0x151   :  { %465 = vmatprep.subr.mxu1 %v303_v51 }
 0x152   :  { %466 = vmatpush3.msra.mxu1 %v287_v52 }
 0x153   :  { %467 = vmatprep.subr.mxu1 %v302_v53 }
 0x154   :  { %468 = vmatpush3.msra.mxu1 %v286_v54 }
 0x1f4   :  { %v207_v62 = vpop.f32.mrf.mxu0 }
 0x1f5   :  { %v208_v63 = vadd.f32 %v207_v62, %v134_v60 }
 0x1f6   :  { %v209_v4 = vpop.f32.mrf.mxu0 }
 0x1f7   :  { %v428_v5 = vmul.f32 -1.442695, %v208_v63  ;;  %v210_v6 = vadd.f32 %v209_v4, %v138_v61 }
 0x1f8   :  { %v213_v7 = vpop.f32.mrf.mxu0 }
 0x1f9   :  { %490 = vpow2.f32 %v428_v5  ;;  %v429_v8 = vmul.f32 -1.442695, %v210_v6  ;;  %v214_v9 = vadd.f32 %v213_v7, %v134_v60 }
 0x1fa   :  { %v215_v10 = vpop.f32.mrf.mxu0 }
 0x1fb   :  { %492 = vpow2.f32 %v429_v8  ;;  %v430_v11 = vmul.f32 -1.442695, %v214_v9  ;;  %v216_v12 = vadd.f32 %v215_v10, %v138_v61 }
 0x1fc   :  { %v219_v13 = vpop.f32.mrf.mxu0 }
 0x1fd   :  { %494 = vpow2.f32 %v430_v11  ;;  %v431_v14 = vmul.f32 -1.442695, %v216_v12  ;;  %v220_v15 = vadd.f32 %v219_v13, %v134_v60 }
 0x1fe   :  { %v221_v18 = vpop.f32.mrf.mxu0 }
 0x1ff   :  { %496 = vpow2.f32 %v431_v14  ;;  %v432_v19 = vmul.f32 -1.442695, %v220_v15  ;;  %v222_v20 = vadd.f32 %v221_v18, %v138_v61 }
 0x200   :  { %v225_v16 = vpop.f32.mrf.mxu0 }
 0x201   :  { %498 = vpow2.f32 %v432_v19  ;;  %v433_v21 = vmul.f32 -1.442695, %v222_v20  ;;  %v226_v22 = vadd.f32 %v225_v16, %v134_v60 }
 0x202   :  { %v227_v25 = vpop.f32.mrf.mxu0 }
 0x203   :  { %500 = vpow2.f32 %v433_v21  ;;  %v434_v17 = vmul.f32 -1.442695, %v226_v22  ;;  %v228_v23 = vadd.f32 %v227_v25, %v138_v61 }
 0x205   :  { %502 = vpow2.f32 %v434_v17  ;;  %v435_v24 = vmul.f32 -1.442695, %v228_v23 }
 0x206   :  { %v491_v26 = vpop.eup %490 }
 0x207   :  { %v254_v27 = vadd.f32 1.0, %v491_v26  ;;  %504 = vpow2.f32 %v435_v24 }
 0x208   :  { %v493_v28 = vpop.eup %492 }
 0x209   :  { %v255_v29 = vadd.f32 1.0, %v493_v28  ;;  %506 = vrcp.f32 %v254_v27 }
 0x20a   :  { %v495_v30 = vpop.eup %494 }
 0x20b   :  { %508 = vrcp.f32 %v255_v29  ;;  %v256_v31 = vadd.f32 1.0, %v495_v30 }
 0x20c   :  { %v497_v32 = vpop.eup %496 }
 0x20d   :  { %v257_v33 = vadd.f32 1.0, %v497_v32  ;;  %510 = vrcp.f32 %v256_v31 }
 0x20e   :  { %v499_v34 = vpop.eup %498 }
 0x20f   :  { %512 = vrcp.f32 %v257_v33  ;;  %v258_v35 = vadd.f32 1.0, %v499_v34 }
 0x210   :  { %v501_v36 = vpop.eup %500 }
 0x211   :  { %v259_v37 = vadd.f32 1.0, %v501_v36  ;;  %514 = vrcp.f32 %v258_v35 }
 0x212   :  { %v503_v38 = vpop.eup %502 }
 0x213   :  { %516 = vrcp.f32 %v259_v37  ;;  %v260_v39 = vadd.f32 1.0, %v503_v38 }
 0x214   :  { %v505_v40 = vpop.eup %504 }
 0x215   :  { %v261_v41 = vadd.f32 1.0, %v505_v40  ;;  %518 = vrcp.f32 %v260_v39 }
 0x216   :  { %v507_v42 = vpop.eup %506 }
 0x217   :  { %520 = vrcp.f32 %v261_v41  ;;  %v278_v45 = vmul.f32 %v507_v42, %v208_v63 }
 0x218   :  { %v509_v43 = vpop.eup %508 }
 0x219   :  { %v279_v44 = vmul.f32 %v509_v43, %v210_v6 }
 0x21a   :  { %v511_v46 = vpop.eup %510 }
 0x21b   :  { %389 = vmatprep.mubr.f32.mxu1 %v279_v44  ;;  %v280_v49 = vmul.f32 %v511_v46, %v214_v9 }
 0x21c   :  { %v513_v47 = vpop.eup %512  ;;  %390 = vmatmul.mubr.f32.vlgmr.msra.gmra.mxu1 %v278_v45 }
 0x21d   :  { %v281_v48 = vmul.f32 %v513_v47, %v216_v12 }
 0x21e   :  { %v515_v50 = vpop.eup %514 }
 0x21f   :  { %394 = vmatprep.mubr.f32.mxu1 %v281_v48  ;;  %v282_v53 = vmul.f32 %v515_v50, %v220_v15 }
 0x220   :  { %v517_v51 = vpop.eup %516  ;;  %395 = vmatmul.mubr.f32.gmra.mxu1 %v280_v49 }
 0x221   :  { %v283_v52 = vmul.f32 %v517_v51, %v222_v20 }
 0x222   :  { %v519_v54 = vpop.eup %518 }
 0x223   :  { %399 = vmatprep.mubr.f32.mxu1 %v283_v52  ;;  %v284_v57 = vmul.f32 %v519_v54, %v226_v22 }
 0x224   :  { %v521_v55 = vpop.eup %520  ;;  %400 = vmatmul.mubr.f32.gmra.mxu1 %v282_v53 }
 0x225   :  { %v285_v56 = vmul.f32 %v521_v55, %v228_v23 }
 0x227   :  { %404 = vmatprep.mubr.f32.mxu1 %v285_v56 }
 0x228   :  { %405 = vmatmul.mubr.f32.gmra.mxu1 %v284_v57 }
 0x2dc   :  { %v469_v58 = vpop.f32.mrf.mxu1 }
 0x2de   :  { %v470_v60 = vpop.f32.mrf.mxu1 }
 0x2df   :  { %v471_v61 = vadd.f32 %v470_v60, %v469_v58 }
 0x2e0   :  { %v472_v62 = vpop.f32.mrf.mxu1 }
 0x2e1   :  { %v392_v63 = vadd.f32 %v471_v61, %v436_v59 }
 0x2e2   :  { %v473_v4 = vpop.f32.mrf.mxu1 }
 0x2e3   :  { %v410_v5 = vmul.f32 0.5, %v392_v63  ;;  %v474_v6 = vadd.f32 %v473_v4, %v472_v62 }
 0x2e4   :  { %v475_v7 = vpop.f32.mrf.mxu1 }
 0x2e5   :  { %v414_v8 = vadd.f32 %v410_v5, %v566_v0  ;;  %v397_v9 = vadd.f32 %v474_v6, %v436_v59 }
 0x2e6   :  { %v476_v10 = vpop.f32.mrf.mxu1 }
 0x2e7   :  { %418 = vst [vmem:[%s838_s7] sm:$0xff] %v414_v8  ;;  %v411_v11 = vmul.f32 0.5, %v397_v9  ;;  %v477_v12 = vadd.f32 %v476_v10, %v475_v7 }
 0x2e8   :  { %v478_v13 = vpop.f32.mrf.mxu1 }
 0x2e9   :  { %v415_v14 = vadd.f32 %v411_v11, %v578_v2  ;;  %v402_v15 = vadd.f32 %v477_v12, %v436_v59 }
 0x2ea   :  { %v479_v18 = vpop.f32.mrf.mxu1 }
 0x2eb   :  { %419 = vst [vmem:[%s838_s7 + $0x8] sm:$0xff] %v415_v14  ;;  %v412_v19 = vmul.f32 0.5, %v402_v15  ;;  %v480_v20 = vadd.f32 %v479_v18, %v478_v13 }
 0x2ed   :  { %v416_v0 = vadd.f32 %v412_v19, %v571_v1  ;;  %v407_v16 = vadd.f32 %v480_v20, %v436_v59 }
 0x2ef   :  { %420 = vst [vmem:[%s838_s7 + $0x10] sm:$0xff] %v416_v0  ;;  %v413_v21 = vmul.f32 0.5, %v407_v16 }
 0x2f1   :  { %v417_v22 = vadd.f32 %v413_v21, %v583_v3 }
 0x2f3   :  { %421 = vst [vmem:[%s838_s7 + $0x18] sm:$0xff] %v417_v22 }

// kernel: conformer_encoder_forward.25
= control target key start
LH: loop header
LB: loop body
LE: loop exit
PB: predicated region body
PF: predicated region fallthrough
CT: control target
= control target key end

     0   :  { %s185_s0 = inlined_call_operand.vmem [shape: f32[32,128], index: 0, kind: input, shape index: {}]   ;;  %s186_s1 = inlined_call_operand.vmem [shape: f32[1,128], index: 1, kind: input, shape index: {}]   ;;  %s187_s2 = inlined_call_operand.vmem [shape: f32[1,128], index: 2, kind: input, shape index: {}]   ;;  %s188_s3 = inlined_call_operand.hbm [shape: f32[32,128], index: 3, kind: output, shape index: {}]  }
   0x1   :  { %v15_v0 = vld [vmem:[%s185_s0] sm:$0xff]  ;;  %v17_v1 = vld [vmem:[%s185_s0 + $0x10] sm:$0xff] }
   0x2   :  { %21 = vadd.xlane.f32.xlu0 %v15_v0  ;;  %25 = vadd.xlane.f32.xlu1 %v17_v1 }
   0x3   :  { %8 = vsyncpa [#allocation3], 0  ;;  %v16_v2 = vld [vmem:[%s185_s0 + $0x8] sm:$0xff]  ;;  %v18_v3 = vld [vmem:[%s185_s0 + $0x18] sm:$0xff]  ;;  %s141_s23 = smov [#allocation2]  }
   0x4   :  { %v106_v33 = vld [vmem:[%s186_s1] ss:$0 sm:$0xff]  ;;  %s95_s1 = sshll.u32 %s141_s23, 4  ;;  %s96_s1 = int_to_ptr.vmem [resolvable:$true] %s95_s1 }
   0x5   :  { %v107_v35 = vld [vmem:[%s187_s2] ss:$0 sm:$0xff]  ;;  %s119_s2 = scalar_lea.vmem %s96_s1, 512  ;;  %p124_p1 = scmp.lt.s32.totalorder %s96_s1, %s96_s1 }
   0x6   :  { %23 = vadd.xlane.f32.xlu0 %v16_v2  ;;  %27 = vadd.xlane.f32.xlu1 %v18_v3  ;;  %p120_p0 = scmp.ne.s32.totalorder %s96_s1, %s119_s2  ;;  %p125_p2 = scmp.lt.s32.totalorder %s119_s2, %s119_s2 }
   0x8   :  { %p126_p3 = por %p125_p2, %p124_p1 }
   0xa   :  { %p127_p4 = pnand %p126_p3, %p120_p0 }
  0x8b   :  { %v22_v4 = vpop.xlane.xlu0 %21  ;;  %v26_v5 = vpop.xlane.xlu1 %25 }
  0x8c   :  { %v30_v6 = vmul.f32 0.0078125, %v22_v4  ;;  %v32_v7 = vmul.f32 0.0078125, %v26_v5 }
  0x8e   :  { %v34_v8 = vsub.f32 %v15_v0, %v30_v6  ;;  %v36_v9 = vsub.f32 %v17_v1, %v32_v7 }
  0x8f   :  { %v24_v10 = vpop.xlane.xlu0 %23  ;;  %v28_v11 = vpop.xlane.xlu1 %27 }
  0x90   :  { %v31_v12 = vmul.f32 0.0078125, %v24_v10  ;;  %v38_v13 = vmul.f32 %v34_v8, %v34_v8  ;;  %v33_v14 = vmul.f32 0.0078125, %v28_v11  ;;  %v40_v17 = vmul.f32 %v36_v9, %v36_v9 }
  0x92   :  { %v35_v15 = vsub.f32 %v16_v2, %v31_v12  ;;  %42 = vadd.xlane.f32.xlu0 %v38_v13  ;;  %v37_v16 = vsub.f32 %v18_v3, %v33_v14 }
  0x94   :  { %v39_v18 = vmul.f32 %v35_v15, %v35_v15  ;;  %v41_v19 = vmul.f32 %v37_v16, %v37_v16 }
  0x96   :  { %46 = vadd.xlane.f32.xlu0 %v40_v17  ;;  %44 = vadd.xlane.f32.xlu1 %v39_v18 }
  0x9a   :  { %48 = vadd.xlane.f32.xlu1 %v41_v19 }
 0x11b   :  { %v43_v20 = vpop.xlane.xlu0 %42 }
 0x11c   :  { %v50_v21 = vmul.f32 0.0078125, %v43_v20 }
 0x11e   :  { %v54_v22 = vadd.f32 1e-05, %v50_v21 }
 0x11f   :  { %v45_v23 = vpop.xlane.xlu1 %44  ;;  %v47_v24 = vpop.xlane.xlu0 %46 }
 0x120   :  { %111 = vrsqrt.f32 %v54_v22  ;;  %v51_v25 = vmul.f32 0.0078125, %v45_v23  ;;  %v52_v26 = vmul.f32 0.0078125, %v47_v24 }
 0x122   :  { %v55_v27 = vadd.f32 1e-05, %v51_v25  ;;  %v56_v28 = vadd.f32 1e-05, %v52_v26 }
 0x123   :  { %v49_v29 = vpop.xlane.xlu1 %48 }
 0x124   :  { %113 = vrsqrt.f32 %v55_v27  ;;  %v53_v30 = vmul.f32 0.0078125, %v49_v29 }
 0x125   :  { %115 = vrsqrt.f32 %v56_v28 }
 0x126   :  { %v57_v31 = vadd.f32 1e-05, %v53_v30 }
 0x128   :  { %117 = vrsqrt.f32 %v57_v31 }
 0x12d   :  { %v112_v32 = vpop.eup %111 }
 0x12e   :  { %v62_v34 = vmul.f32 %v112_v32, %v34_v8 }
 0x130   :  { %v72_v36 = vmul.f32 %v106_v33, %v62_v34 }
 0x131   :  { %v114_v37 = vpop.eup %113 }
 0x132   :  { %v116_v38 = vpop.eup %115  ;;  %v63_v39 = vmul.f32 %v114_v37, %v35_v15  ;;  %v82_v40 = vadd.f32 %v107_v35, %v72_v36 }
 0x133   :  { %v64_v41 = vmul.f32 %v116_v38, %v36_v9 }
 0x134   :  { %v73_v42 = vmul.f32 %v106_v33, %v63_v39  ;;  %86 = vst [vmem:[#allocation2] sm:$0xff] %v82_v40 }
 0x135   :  { %v118_v43 = vpop.eup %117  ;;  %v74_v44 = vmul.f32 %v106_v33, %v64_v41 }
 0x136   :  { %v65_v45 = vmul.f32 %v118_v43, %v37_v16  ;;  %v83_v46 = vadd.f32 %v107_v35, %v73_v42 }
 0x137   :  { %v84_v47 = vadd.f32 %v107_v35, %v74_v44 }
 0x138   :  { %v75_v48 = vmul.f32 %v106_v33, %v65_v45  ;;  %87 = vst [vmem:[#allocation2 + $0x8] sm:$0xff] %v83_v46 }
 0x139   :  { %88 = vst [vmem:[#allocation2 + $0x10] sm:$0xff] %v84_v47 }
 0x13a   :  { %v85_v49 = vadd.f32 %v107_v35, %v75_v48 }
 0x13c   :  { %89 = vst [vmem:[#allocation2 + $0x18] sm:$0xff] %v85_v49 }
 0x13d   :  { %130 = shalt.err (!%p127_p4)
}
 0x13e   :  { %s142_s24 = smov 128   ;;  %s143_s25 = smov 8  }
 0x13f   :  { %101 = dma.vmem_to_hbm [thread:$0]  %s96_s1, 512, %s188_s3, [#allocation3], %s142_s24, %s142_s24, %s143_s25  }
 0x140   :  { %139 = dma.done.wait [#allocation3], 512  }
 0x141   :  { %140 = vsyncadd [#allocation3], 4294966784 }
 0x142   :  { %105 = vsyncpa [#allocation3], 1 }

// kernel: conformer_encoder_forward.15
= control target key start
LH: loop header
LB: loop body
LE: loop exit
PB: predicated region body
PF: predicated region fallthrough
CT: control target
= control target key end

     0   :  { %s1978_s24 = smov 0   ;;  %s2170_s0 = inlined_call_operand.vmem [shape: f32[2,4,16,32], index: 0, kind: input, shape index: {}]   ;;  %s2171_s1 = inlined_call_operand.vmem [shape: f32[2,4,16,32], index: 1, kind: input, shape index: {}]   ;;  %s2172_s2 = inlined_call_operand.vmem [shape: f32[2,4,16,32], index: 2, kind: input, shape index: {}]   ;;  %s2173_s3 = inlined_call_operand.vmem [shape: f32[2,4,16,16], index: 3, kind: input, shape index: {}]   ;;  %s2174_s4 = inlined_call_operand.vmem [shape: f32[4,32,128], index: 4, kind: input, shape index: {}]   ;;  %s2175_s5 = inlined_call_operand.vmem [shape: f32[1,128], index: 5, kind: input, shape index: {}]   ;;  %s2176_s6 = inlined_call_operand.vmem [shape: f32[2,16,128], index: 6, kind: input, shape index: {}]   ;;  %s2177_s7 = inlined_call_operand.vmem [shape: f32[2,16,128], index: 7, kind: output, shape index: {}]  }
   0x1 LB: > { %s1640_s25 = sadd.s32 4294967295, %s1936_s24   ;;  %p1644_p0 = scmp.ge.s32.totalorder %s1936_s24, 1  ;;  %s1936_s24 = sphi %s1978_s24, %s17_s24  }
   0x2   : > { %p277_p1 = scmp.lt.s32.totalorder %s1936_s24, 3 }
   0x4   : > { %p278_p2 = pnand %p1644_p0, %p277_p1 }
   0x5   : > { %p329_p3 = scmp.lt.s32.totalorder (!%p278_p2), %s1640_s25, 1 }
   0x6   : > { %281 = sbr.rel (%p278_p2) target bundleno = 1854 (0x73e), region = 48 }
   0xb   : > { %s2179_s25 = smov (!%p329_p3, %s1640_s25), 1  ;;  %vm374_vm0 = vcmask 261120   ;;  %vm464_vm1 = vcmask 130048   ;;  %v571_v56 = vld [vmem:[%s2174_s4 + $0x18] sm:$0xff]  ;;  %v570_v57 = vld [vmem:[%s2174_s4 + $0x10] sm:$0xff]  ;;  %v569_v58 = vld [vmem:[%s2174_s4 + $0x8] sm:$0xff] }
   0xc   : > { %s1989_s26 = sshll.u32 %s2179_s25, 6  ;;  %v568_v59 = vld [vmem:[%s2174_s4] sm:$0xff]  ;;  %v1683_v61 = vld [vmem:[%s2174_s4 + $0x38] sm:$0xff]  ;;  %s1732_s10 = sshll.u32 %s2179_s25, 4 }
   0xd   : > { %s1995_s29 = scalar_lea.vmem %s2171_s1, %s1989_s26  ;;  %s2001_s9 = scalar_lea.vmem %s2170_s0, %s1989_s26 }
   0xe   : > { %v369_v0 = vld [vmem:[%s1995_s29 + $0x8] sm:$0xff]  ;;  %v368_v1 = vld [vmem:[%s1995_s29] sm:$0xff]  ;;  %v1669_v3 = vld [vmem:[%s1995_s29 + $0x18] sm:$0xff]  ;;  %s2027_s12 = scalar_lea.vmem %s2173_s3, %s1989_s26  ;;  %s2044_s15 = scalar_lea.vmem %s2172_s2, %s1989_s26 }
   0xf   : > { %v366_v2 = vld [vmem:[%s2001_s9] sm:$0xff]  ;;  %1790 = vmatprep.subr.msk.mxu0 %vm374_vm0, %v369_v0  ;;  %v367_v4 = vld [vmem:[%s2001_s9 + $0x8] sm:$0xff]  ;;  %v1666_v5 = vld [vmem:[%s2001_s9 + $0x10] sm:$0xff]  ;;  %s358_s14 = scalar_lea.vmem %s2177_s7, %s1732_s10 }
  0x10   : > { %1794 = vmatprep.mubr.msk.f32.mxu0 %vm374_vm0, %v366_v2  ;;  %1791 = vmatpush3.xpose.msk.msra.mxu0 %vm374_vm0, %v369_v0  ;;  %v1668_v6 = vld [vmem:[%s1995_s29 + $0x10] sm:$0xff]  ;;  %v1667_v7 = vld [vmem:[%s2001_s9 + $0x18] sm:$0xff]  ;;  %v373_v8 = vld [vmem:[%s2027_s12 + $0x8] sm:$0xff] }
  0x11   : > { %1792 = vmatprep.subr.msk.mxu0 %vm374_vm0, %v368_v1  ;;  %v372_v10 = vld [vmem:[%s2027_s12] sm:$0xff]  ;;  %v1672_v18 = vld [vmem:[%s2027_s12 + $0x10] sm:$0xff]  ;;  %v1673_v33 = vld [vmem:[%s2027_s12 + $0x18] sm:$0xff] }
  0x12   : > { %v371_v43 = vld [vmem:[%s2044_s15 + $0x8] sm:$0xff]  ;;  %v370_v44 = vld [vmem:[%s2044_s15] sm:$0xff]  ;;  %v1671_v60 = vld [vmem:[%s2044_s15 + $0x18] sm:$0xff] }
  0x13   : > { %1797 = vmatprep.subr.mxu1 %v371_v43 }
  0x14   : > { %1793 = vmatpush3.xpose.msk.msra.mxu0 %vm374_vm0, %v368_v1  ;;  %1798 = vmatpush3.msra.mxu1 %v371_v43  ;;  %v1690_v43 = vld [vmem:[%s2044_s15 + $0x20] sm:$0xff] }
  0x15   : > { %1815 = vmatprep.subr.msk.mxu0 %vm374_vm0, %v1669_v3  ;;  %1799 = vmatprep.subr.mxu1 %v370_v44 }
  0x16   : > { %1800 = vmatpush3.msra.mxu1 %v370_v44  ;;  %v1657_v44 = vld [vmem:[%s2175_s5] ss:$0 sm:$0xff] }
  0x17   : > { %1795 = vmatmul.mubr.msk.f32.vlgmr.msra.gmra.mxu0 %vm374_vm0, %v367_v4  ;;  %1804 = vmatprep.subr.mxu1 %v571_v56  ;;  %v1670_v4 = vld [vmem:[%s2044_s15 + $0x10] sm:$0xff] }
  0x18   : > { %1816 = vmatpush3.xpose.msk.msra.mxu0 %vm374_vm0, %v1669_v3  ;;  %1819 = vmatprep.mubr.msk.f32.mxu0 %vm374_vm0, %v1666_v5 }
  0x19   : > { %1817 = vmatprep.subr.msk.mxu0 %vm374_vm0, %v1668_v6 }
  0x1c   : > { %1818 = vmatpush3.xpose.msk.msra.mxu0 %vm374_vm0, %v1668_v6  ;;  %v1689_v6 = vld [vmem:[%s1995_s29 + $0x28] sm:$0xff] }
  0x1d   : > { %1829 = vmatprep.subr.mxu0 %v1683_v61 }
  0x1f   : > { %1820 = vmatmul.mubr.msk.f32.vlgmr.msra.gmra.mxu0 %vm374_vm0, %v1667_v7 }
  0x20   : > { %1830 = vmatpush3.msra.mxu0 %v1683_v61 }
  0xd7   : > { %v1796_v9 = vpop.f32.mrf.mxu0 }
  0xd8   : > { %v459_v12 = vadd.f32 %v1796_v9, %v373_v8  ;;  %v1686_v8 = vld [vmem:[%s2001_s9 + $0x20] sm:$0xff] }
  0xd9   : > { %v453_v11 = vpop.f32.mrf.mxu0  ;;  %v1688_v9 = vld [vmem:[%s1995_s29 + $0x20] sm:$0xff] }
  0xda   : > { %v454_v13 = vadd.f32 %v453_v11, %v372_v10  ;;  %v463_v15 = vmul.f32 0.17677669, %v459_v12  ;;  %v1687_v10 = vld [vmem:[%s2001_s9 + $0x28] sm:$0xff]  ;;  %v1682_v11 = vld [vmem:[%s2174_s4 + $0x30] sm:$0xff] }
  0xdb   : > { %1831 = vmatprep.subr.mxu0 %v1682_v11  ;;  %v1681_v12 = vld [vmem:[%s2174_s4 + $0x28] sm:$0xff] }
  0xdc   : > { %v462_v14 = vmul.f32 0.17677669, %v454_v13  ;;  %v468_v21 = vsel %vm464_vm1, %v463_v15, -inf  ;;  %1832 = vmatpush3.msra.mxu0 %v1682_v11  ;;  %v1680_v13 = vld [vmem:[%s2174_s4 + $0x20] sm:$0xff] }
  0xdd   : > { %1833 = vmatprep.subr.mxu0 %v1681_v12 }
  0xde   : > { %v465_v16 = vsel %vm464_vm1, %v462_v14, -inf  ;;  %1834 = vmatpush3.msra.mxu0 %v1681_v12 }
  0xdf   : > { %v1821_v17 = vpop.f32.mrf.mxu0  ;;  %466 = vmax.xlane.f32.xlu0 %v465_v16  ;;  %1835 = vmatprep.subr.mxu0 %v1680_v13 }
  0xe0   : > { %v751_v34 = vadd.f32 %v1821_v17, %v1673_v33  ;;  %1836 = vmatpush3.msra.mxu0 %v1680_v13  ;;  %v1703_v13 = vld [vmem:[%s2174_s4 + $0x58] sm:$0xff] }
  0xe1   : > { %v745_v19 = vpop.f32.mrf.mxu0 }
  0xe2   : > { %v746_v20 = vadd.f32 %v1672_v18, %v745_v19  ;;  %v755_v37 = vmul.f32 0.17677669, %v751_v34  ;;  %v1706_v19 = vld [vmem:[%s2001_s9 + $0x30] sm:$0xff] }
  0xe3   : > { %469 = vmax.xlane.f32.xlu0 %v468_v21  ;;  %v1693_v21 = vld [vmem:[%s2027_s12 + $0x28] sm:$0xff] }
  0xe4   : > { %v754_v22 = vmul.f32 0.17677669, %v746_v20  ;;  %v759_v40 = vsel %vm464_vm1, %v755_v37, -inf  ;;  %v1708_v20 = vld [vmem:[%s1995_s29 + $0x30] sm:$0xff] }
  0xe6   : > { %v756_v23 = vsel %vm464_vm1, %v754_v22, -inf }
  0xe7   : > { %757 = vmax.xlane.f32.xlu0 %v756_v23  ;;  %v1692_v23 = vld [vmem:[%s2027_s12 + $0x20] sm:$0xff] }
 0x168   : > { %v467_v24 = vpop.xlane.xlu0 %466 }
 0x169   : > { %v471_v25 = vsub.f32 %v462_v14, %v467_v24  ;;  %v1709_v14 = vld [vmem:[%s1995_s29 + $0x38] sm:$0xff]  ;;  %s353_s29 = scalar_lea.vmem %s2176_s6, %s1732_s10 }
 0x16a   : > { %1865 = vmatprep.subr.msk.mxu0 %vm374_vm0, %v1709_v14 }
 0x16b   : > { %v473_v26 = vmul.f32 1.442695, %v471_v25  ;;  %v1707_v25 = vld [vmem:[%s2001_s9 + $0x38] sm:$0xff] }
 0x16c   : > { %v470_v27 = vpop.xlane.xlu0 %469 }
 0x16d   : > { %1898 = vpow2.f32 %v473_v26  ;;  %v472_v28 = vsub.f32 %v463_v15, %v470_v27 }
 0x16f   : > { %v475_v29 = vmul.f32 1.442695, %v472_v28 }
 0x170   : > { %v758_v30 = vpop.xlane.xlu0 %757 }
 0x171   : > { %1900 = vpow2.f32 %v475_v29  ;;  %v762_v31 = vsub.f32 %v754_v22, %v758_v30 }
 0x173   : > { %v764_v32 = vmul.f32 1.442695, %v762_v31 }
 0x175   : > { %1902 = vpow2.f32 %v764_v32 }
 0x17a   : > { %v1899_v35 = vpop.eup %1898 }
 0x17b   : > { %v477_v36 = vsel %vm464_vm1, %v1899_v35, 0.0 }
 0x17c   : > { %478 = vadd.xlane.f32.xlu1 %v477_v36 }
 0x17e   : > { %v1901_v38 = vpop.eup %1900 }
 0x17f   : > { %v480_v39 = vsel %vm464_vm1, %v1901_v38, 0.0 }
 0x180   : > { %481 = vadd.xlane.f32.xlu1 %v480_v39 }
 0x182   : > { %v1903_v41 = vpop.eup %1902 }
 0x183   : > { %v768_v42 = vsel %vm464_vm1, %v1903_v41, 0.0 }
 0x184   : > { %760 = vmax.xlane.f32.xlu1 %v759_v40  ;;  %769 = vadd.xlane.f32.xlu0 %v768_v42  ;;  %v1691_v42 = vld [vmem:[%s2044_s15 + $0x28] sm:$0xff] }
 0x205   : > { %v479_v45 = vpop.xlane.xlu1 %478 }
 0x206   : > { %1904 = vrcp.f32 %v479_v45 }
 0x209   : > { %v482_v46 = vpop.xlane.xlu1 %481 }
 0x20a   : > { %1906 = vrcp.f32 %v482_v46 }
 0x20d   : > { %v761_v47 = vpop.xlane.xlu1 %760  ;;  %v770_v62 = vpop.xlane.xlu0 %769 }
 0x20e   : > { %v763_v48 = vsub.f32 %v755_v37, %v761_v47 }
 0x210   : > { %v766_v49 = vmul.f32 1.442695, %v763_v48 }
 0x212   : > { %1908 = vpow2.f32 %v766_v49 }
 0x213   : > { %v1905_v50 = vpop.eup %1904  ;;  %1910 = vrcp.f32 %v770_v62 }
 0x214   : > { %v484_v51 = vmul.f32 %v1905_v50, %v1899_v35 }
 0x216   : > { %1801 = vmatprep.mubr.msk.f32.mxu1 %vm464_vm1, %v484_v51  ;;  %v1713_v51 = vld [vmem:[%s2027_s12 + $0x38] sm:$0xff] }
 0x217   : > { %v1907_v52 = vpop.eup %1906 }
 0x218   : > { %v486_v53 = vmul.f32 %v1907_v52, %v1901_v38 }
 0x21a   : > { %1802 = vmatmul.mubr.msk.f32.vlgmr.msra.gmra.mxu1 %vm464_vm1, %v486_v53  ;;  %v1712_v53 = vld [vmem:[%s2027_s12 + $0x30] sm:$0xff] }
 0x21b   : > { %1805 = vmatpush3.msra.mxu1 %v571_v56 }
 0x21c   : > { %1806 = vmatprep.subr.mxu1 %v570_v57 }
 0x21d   : > { %1807 = vmatpush3.msra.mxu1 %v570_v57 }
 0x21e   : > { %1808 = vmatprep.subr.mxu1 %v569_v58 }
 0x21f   : > { %v1909_v54 = vpop.eup %1908  ;;  %1809 = vmatpush3.msra.mxu1 %v569_v58 }
 0x220   : > { %v771_v55 = vsel %vm464_vm1, %v1909_v54, 0.0  ;;  %1810 = vmatprep.subr.mxu1 %v568_v59  ;;  %v1911_v0 = vpop.eup %1910 }
 0x221   : > { %772 = vadd.xlane.f32.xlu1 %v771_v55  ;;  %1811 = vmatpush3.msra.mxu1 %v568_v59  ;;  %v775_v5 = vmul.f32 %v1911_v0, %v1903_v41 }
 0x222   : > { %1822 = vmatprep.subr.mxu1 %v1671_v60 }
 0x2aa   : > { %v773_v63 = vpop.xlane.xlu1 %772 }
 0x2ab   : > { %1912 = vrcp.f32 %v773_v63 }
 0x2b8   : > { %v1913_v3 = vpop.eup %1912 }
 0x2b9   : > { %v777_v7 = vmul.f32 %v1913_v3, %v1909_v54 }
 0x2da   : > { %v1803_v1 = vpop.f32.mrf.mxu1 }
 0x2dc   : > { %v559_v2 = vpop.f32.mrf.mxu1 }
 0x2dd   : > { %1812 = vmatprep.mubr.msk.f32.mxu1 %vm374_vm0, %v559_v2 }
 0x2de   : > { %1813 = vmatmul.mubr.msk.f32.vlgmr.msra.gmra.mxu1 %vm374_vm0, %v1803_v1 }
 0x2df   : > { %1823 = vmatpush3.msra.mxu1 %v1671_v60  ;;  %1826 = vmatprep.mubr.msk.f32.mxu1 %vm464_vm1, %v775_v5 }
 0x2e0   : > { %1824 = vmatprep.subr.mxu1 %v1670_v4 }
 0x2e1   : > { %1825 = vmatpush3.msra.mxu1 %v1670_v4 }
 0x2e2   : > { %1840 = vmatprep.subr.msk.mxu1 %vm374_vm0, %v1689_v6  ;;  %1827 = vmatmul.mubr.msk.f32.vlgmr.msra.gmra.mxu1 %vm464_vm1, %v777_v7 }
 0x2e3   : > { %1841 = vmatpush3.xpose.msk.msra.mxu1 %vm374_vm0, %v1689_v6  ;;  %1844 = vmatprep.mubr.msk.f32.mxu1 %vm374_vm0, %v1686_v8 }
 0x2e4   : > { %1842 = vmatprep.subr.msk.mxu1 %vm374_vm0, %v1688_v9 }
 0x2e7   : > { %1843 = vmatpush3.xpose.msk.msra.mxu1 %vm374_vm0, %v1688_v9 }
 0x2e8   : > { %1847 = vmatprep.subr.mxu1 %v1691_v42 }
 0x2ea   : > { %1845 = vmatmul.mubr.msk.f32.vlgmr.msra.gmra.mxu1 %vm374_vm0, %v1687_v10 }
 0x2eb   : > { %1848 = vmatpush3.msra.mxu1 %v1691_v42 }
 0x2ec   : > { %1849 = vmatprep.subr.mxu1 %v1690_v43 }
 0x2ed   : > { %1850 = vmatpush3.msra.mxu1 %v1690_v43 }
 0x2ee   : > { %1854 = vmatprep.subr.mxu1 %v1703_v13 }
 0x39e   : > { %v1814_v15 = vpop.f32.mrf.mxu1 }
 0x39f   : > { %v654_v45 = vadd.f32 %v1814_v15, %v1657_v44  ;;  %v1701_v15 = vld [vmem:[%s2174_s4 + $0x48] sm:$0xff] }
 0x3a0   : > { %v644_v16 = vpop.f32.mrf.mxu1 }
 0x3a1   : > { %v653_v47 = vadd.f32 %v1657_v44, %v644_v16  ;;  %v1700_v16 = vld [vmem:[%s2174_s4 + $0x40] sm:$0xff] }
 0x3a2   : > { %v1828_v17 = vpop.f32.mrf.mxu1 }
 0x3a4   : > { %v850_v18 = vpop.f32.mrf.mxu1 }
 0x3a5   : > { %1837 = vmatprep.mubr.msk.f32.mxu0 %vm374_vm0, %v850_v18 }
 0x3a6   : > { %1838 = vmatmul.mubr.msk.f32.vlgmr.msra.gmra.mxu0 %vm374_vm0, %v1828_v17  ;;  %v1711_v17 = vld [vmem:[%s2044_s15 + $0x38] sm:$0xff] }
 0x3a7   : > { %1866 = vmatpush3.xpose.msk.msra.mxu0 %vm374_vm0, %v1709_v14  ;;  %1869 = vmatprep.mubr.msk.f32.mxu0 %vm374_vm0, %v1706_v19  ;;  %v1702_v14 = vld [vmem:[%s2174_s4 + $0x50] sm:$0xff] }
 0x3a8   : > { %1867 = vmatprep.subr.msk.mxu0 %vm374_vm0, %v1708_v20 }
 0x3aa   : > { %v1846_v22 = vpop.f32.mrf.mxu1 }
 0x3ab   : > { %v1043_v24 = vadd.f32 %v1846_v22, %v1693_v21  ;;  %1868 = vmatpush3.xpose.msk.msra.mxu0 %vm374_vm0, %v1708_v20 }
 0x3ac   : > { %v1037_v26 = vpop.f32.mrf.mxu1 }
 0x3ad   : > { %v1047_v27 = vmul.f32 0.17677669, %v1043_v24  ;;  %v1038_v28 = vadd.f32 %v1692_v23, %v1037_v26  ;;  %v1710_v24 = vld [vmem:[%s2044_s15 + $0x30] sm:$0xff] }
 0x3ae   : > { %1870 = vmatmul.mubr.msk.f32.vlgmr.msra.gmra.mxu0 %vm374_vm0, %v1707_v25 }
 0x3af   : > { %v1046_v29 = vmul.f32 0.17677669, %v1038_v28  ;;  %v1051_v30 = vsel %vm464_vm1, %v1047_v27, -inf  ;;  %v1722_v28 = vld [vmem:[%s2174_s4 + $0x70] sm:$0xff] }
 0x3b0   : > { %1052 = vmax.xlane.f32.xlu1 %v1051_v30  ;;  %v1720_v30 = vld [vmem:[%s2174_s4 + $0x60] sm:$0xff] }
 0x3b1   : > { %v1048_v31 = vsel %vm464_vm1, %v1046_v29, -inf }
 0x3b2   : > { %1049 = vmax.xlane.f32.xlu0 %v1048_v31 }
 0x439   : > { %v1053_v32 = vpop.xlane.xlu1 %1052 }
 0x43a   : > { %v1055_v33 = vsub.f32 %v1047_v27, %v1053_v32  ;;  %v1723_v27 = vld [vmem:[%s2174_s4 + $0x78] sm:$0xff] }
 0x43b   : > { %v1050_v34 = vpop.xlane.xlu0 %1049  ;;  %1879 = vmatprep.subr.mxu0 %v1723_v27 }
 0x43c   : > { %v1058_v35 = vmul.f32 1.442695, %v1055_v33  ;;  %v1054_v36 = vsub.f32 %v1046_v29, %v1050_v34  ;;  %1880 = vmatpush3.msra.mxu0 %v1723_v27  ;;  %v1721_v29 = vld [vmem:[%s2174_s4 + $0x68] sm:$0xff] }
 0x43d   : > { %1881 = vmatprep.subr.mxu0 %v1722_v28 }
 0x43e   : > { %1914 = vpow2.f32 %v1058_v35  ;;  %v1056_v37 = vmul.f32 1.442695, %v1054_v36  ;;  %1882 = vmatpush3.msra.mxu0 %v1722_v28 }
 0x43f   : > { %1883 = vmatprep.subr.mxu0 %v1721_v29 }
 0x440   : > { %1916 = vpow2.f32 %v1056_v37  ;;  %1884 = vmatpush3.msra.mxu0 %v1721_v29 }
 0x441   : > { %1885 = vmatprep.subr.mxu0 %v1720_v30 }
 0x442   : > { %1886 = vmatpush3.msra.mxu0 %v1720_v30 }
 0x44b   : > { %v1915_v38 = vpop.eup %1914 }
 0x44c   : > { %v1063_v39 = vsel %vm464_vm1, %v1915_v38, 0.0 }
 0x44d   : > { %v1917_v40 = vpop.eup %1916  ;;  %1064 = vadd.xlane.f32.xlu1 %v1063_v39 }
 0x44e   : > { %v1060_v41 = vsel %vm464_vm1, %v1917_v40, 0.0 }
 0x44f   : > { %1061 = vadd.xlane.f32.xlu0 %v1060_v41  ;;  %v1531_v41 = vld [vmem:[%s353_s29] sm:$0xff] }
 0x466   : > { %v1839_v46 = vpop.f32.mrf.mxu0 }
 0x467   : > { %v2114_v48 = vadd.f32 %v1839_v46, %v654_v45 }
 0x468   : > { %v936_v49 = vpop.f32.mrf.mxu0 }
 0x469   : > { %v2116_v50 = vadd.f32 %v936_v49, %v653_v47 }
 0x46e   : > { %v1871_v52 = vpop.f32.mrf.mxu0 }
 0x46f   : > { %v1335_v54 = vadd.f32 %v1871_v52, %v1713_v51 }
 0x470   : > { %v1329_v55 = vpop.f32.mrf.mxu0 }
 0x471   : > { %v1339_v56 = vmul.f32 0.17677669, %v1335_v54  ;;  %v1330_v57 = vadd.f32 %v1712_v53, %v1329_v55 }
 0x473   : > { %v1338_v58 = vmul.f32 0.17677669, %v1330_v57  ;;  %v1343_v59 = vsel %vm464_vm1, %v1339_v56, -inf }
 0x474   : > { %1344 = vmax.xlane.f32.xlu1 %v1343_v59 }
 0x475   : > { %v1340_v60 = vsel %vm464_vm1, %v1338_v58, -inf }
 0x476   : > { %1341 = vmax.xlane.f32.xlu0 %v1340_v60 }
 0x4d6   : > { %v1065_v61 = vpop.xlane.xlu1 %1064 }
 0x4d7   : > { %1918 = vrcp.f32 %v1065_v61 }
 0x4d8   : > { %v1062_v62 = vpop.xlane.xlu0 %1061 }
 0x4d9   : > { %1920 = vrcp.f32 %v1062_v62 }
 0x4e4   : > { %v1919_v63 = vpop.eup %1918 }
 0x4e5   : > { %v1069_v2 = vmul.f32 %v1919_v63, %v1915_v38  ;;  %v1532_v38 = vld [vmem:[%s353_s29 + $0x8] sm:$0xff] }
 0x4e6   : > { %v1921_v0 = vpop.eup %1920 }
 0x4e7   : > { %v1067_v1 = vmul.f32 %v1921_v0, %v1917_v40 }
 0x4e9   : > { %1851 = vmatprep.mubr.msk.f32.mxu1 %vm464_vm1, %v1067_v1 }
 0x4ea   : > { %1852 = vmatmul.mubr.msk.f32.vlgmr.msra.gmra.mxu1 %vm464_vm1, %v1069_v2 }
 0x4eb   : > { %1855 = vmatpush3.msra.mxu1 %v1703_v13 }
 0x4ec   : > { %1856 = vmatprep.subr.mxu1 %v1702_v14 }
 0x4ed   : > { %1857 = vmatpush3.msra.mxu1 %v1702_v14 }
 0x4ee   : > { %1858 = vmatprep.subr.mxu1 %v1701_v15 }
 0x4ef   : > { %1859 = vmatpush3.msra.mxu1 %v1701_v15 }
 0x4f0   : > { %1860 = vmatprep.subr.mxu1 %v1700_v16 }
 0x4f1   : > { %1861 = vmatpush3.msra.mxu1 %v1700_v16 }
 0x4f2   : > { %1872 = vmatprep.subr.mxu1 %v1711_v17 }
 0x4fd   : > { %v1345_v3 = vpop.xlane.xlu1 %1344 }
 0x4fe   : > { %v1347_v4 = vsub.f32 %v1339_v56, %v1345_v3 }
 0x4ff   : > { %v1342_v5 = vpop.xlane.xlu0 %1341 }
 0x500   : > { %v1350_v6 = vmul.f32 1.442695, %v1347_v4  ;;  %v1346_v7 = vsub.f32 %v1338_v58, %v1342_v5 }
 0x502   : > { %1922 = vpow2.f32 %v1350_v6  ;;  %v1348_v8 = vmul.f32 1.442695, %v1346_v7 }
 0x504   : > { %1924 = vpow2.f32 %v1348_v8 }
 0x50f   : > { %v1923_v9 = vpop.eup %1922 }
 0x510   : > { %v1355_v10 = vsel %vm464_vm1, %v1923_v9, 0.0 }
 0x511   : > { %v1925_v11 = vpop.eup %1924  ;;  %1356 = vadd.xlane.f32.xlu1 %v1355_v10 }
 0x512   : > { %v1352_v12 = vsel %vm464_vm1, %v1925_v11, 0.0 }
 0x513   : > { %1353 = vadd.xlane.f32.xlu0 %v1352_v12 }
 0x59a   : > { %v1357_v19 = vpop.xlane.xlu1 %1356 }
 0x59c   : > { %v1354_v18 = vpop.xlane.xlu0 %1353 }
 0x59d   : > { %1926 = vrcp.f32 %v1354_v18 }
 0x59e   : > { %1928 = vrcp.f32 %v1357_v19 }
 0x5aa   : > { %v1927_v20 = vpop.eup %1926  ;;  %v1853_v21 = vpop.f32.mrf.mxu1 }
 0x5ab   : > { %v1929_v23 = vpop.eup %1928  ;;  %v1359_v25 = vmul.f32 %v1927_v20, %v1925_v11 }
 0x5ac   : > { %v1142_v22 = vpop.f32.mrf.mxu1  ;;  %v1361_v26 = vmul.f32 %v1929_v23, %v1923_v9 }
 0x5ad   : > { %1862 = vmatprep.mubr.msk.f32.mxu1 %vm374_vm0, %v1142_v22 }
 0x5ae   : > { %1863 = vmatmul.mubr.msk.f32.vlgmr.msra.gmra.mxu1 %vm374_vm0, %v1853_v21 }
 0x5af   : > { %1873 = vmatpush3.msra.mxu1 %v1711_v17  ;;  %1876 = vmatprep.mubr.msk.f32.mxu1 %vm464_vm1, %v1359_v25 }
 0x5b0   : > { %1874 = vmatprep.subr.mxu1 %v1710_v24 }
 0x5b1   : > { %1875 = vmatpush3.msra.mxu1 %v1710_v24 }
 0x5b2   : > { %1877 = vmatmul.mubr.msk.f32.vlgmr.msra.gmra.mxu1 %vm464_vm1, %v1361_v26 }
 0x66e   : > { %v1864_v31 = vpop.f32.mrf.mxu1 }
 0x66f   : > { %v1238_v32 = vadd.f32 %v1864_v31, %v2114_v48 }
 0x670   : > { %v1228_v33 = vpop.f32.mrf.mxu1 }
 0x671   : > { %v1237_v34 = vadd.f32 %v1228_v33, %v2116_v50 }
 0x672   : > { %v1878_v35 = vpop.f32.mrf.mxu1 }
 0x674   : > { %v1434_v36 = vpop.f32.mrf.mxu1 }
 0x675   : > { %1887 = vmatprep.mubr.msk.f32.mxu0 %vm374_vm0, %v1434_v36 }
 0x676   : > { %1888 = vmatmul.mubr.msk.f32.vlgmr.msra.gmra.mxu0 %vm374_vm0, %v1878_v35 }
 0x736   : > { %v1889_v37 = vpop.f32.mrf.mxu0 }
 0x737   : > { %v1530_v39 = vadd.f32 %v1889_v37, %v1238_v32 }
 0x738   : > { %v1520_v40 = vpop.f32.mrf.mxu0 }
 0x739   : > { %v1534_v42 = vadd.f32 %v1532_v38, %v1530_v39  ;;  %v1529_v43 = vadd.f32 %v1520_v40, %v1237_v34 }
 0x73b   : > { %1536 = vst [vmem:[%s358_s14 + $0x8] sm:$0xff] %v1534_v42  ;;  %v1533_v44 = vadd.f32 %v1531_v41, %v1529_v43 }
 0x73d   : > { %1535 = vst [vmem:[%s358_s14] sm:$0xff] %v1533_v44 }
 0x73e PF: > { %s17_s24 = sadd.s32 1, %s1936_s24  }
 0x73f   : > { %p14_p4 = scmp.ge.s32.totalorder %s17_s24, 4  }
 0x741   :  { %16 = sbr.rel (!%p14_p4) target bundleno = 1 (0x1), region = 105 }

// kernel: conformer_encoder_forward.16
= control target key start
LH: loop header
LB: loop body
LE: loop exit
PB: predicated region body
PF: predicated region fallthrough
CT: control target
= control target key end

     0   :  { %s1595_s13 = smov 0   ;;  %s1850_s0 = inlined_call_operand.vmem [shape: f32[2,16,128], index: 0, kind: input, shape index: {}]   ;;  %s1851_s1 = inlined_call_operand.vmem [shape: f32[1,128], index: 1, kind: input, shape index: {}]   ;;  %s1852_s2 = inlined_call_operand.vmem [shape: f32[1,128], index: 2, kind: input, shape index: {}]   ;;  %s1853_s3 = inlined_call_operand.vmem [shape: f32[128,128], index: 3, kind: input, shape index: {}]   ;;  %s1854_s4 = inlined_call_operand.vmem [shape: f32[128,128], index: 4, kind: input, shape index: {}]   ;;  %s1855_s5 = inlined_call_operand.vmem [shape: f32[5,16,16], index: 5, kind: input, shape index: {}]   ;;  %s1856_s6 = inlined_call_operand.vmem [shape: f32[5,128], index: 6, kind: input, shape index: {}]   ;;  %s1857_s7 = inlined_call_operand.vmem [shape: f32[1,128], index: 7, kind: input, shape index: {}]   ;;  %s1858_s8 = inlined_call_operand.vmem [shape: f32[1,128], index: 8, kind: input, shape index: {}]   ;;  %s1859_s9 = inlined_call_operand.vmem [shape: f32[128,128], index: 9, kind: input, shape index: {}]   ;;  %s1860_s10 = inlined_call_operand.vmem [shape: f32[2,16,128], index: 10, kind: output, shape index: {}]  }
   0x1 LB: > { %s1246_s14 = sadd.s32 4294967295, %s1538_s13   ;;  %p1250_p0 = scmp.ge.s32.totalorder %s1538_s13, 1  ;;  %s1538_s13 = sphi %s1595_s13, %s20_s13  }
   0x2   : > { %p312_p1 = scmp.lt.s32.totalorder %s1538_s13, 3 }
   0x4   : > { %p313_p2 = pnand %p1250_p0, %p312_p1 }
   0x5   : > { %p350_p3 = scmp.lt.s32.totalorder (!%p313_p2), %s1246_s14, 1 }
   0x6   : > { %316 = sbr.rel (%p313_p2) target bundleno = 1008 (0x3f0), region = 60 }
   0xb   : > { %s1862_s14 = smov (!%p350_p3, %s1246_s14), 1  ;;  %v418_v2 = vld [vmem:[%s1853_s3 + $0x78] sm:$0xff]  ;;  %v417_v4 = vld [vmem:[%s1853_s3 + $0x70] sm:$0xff]  ;;  %v416_v14 = vld [vmem:[%s1853_s3 + $0x68] sm:$0xff]  ;;  %vm601_vm0 = vcmask 130048  }
   0xc   : > { %s1288_s15 = sshll.u32 %s1862_s14, 4  ;;  %v509_v3 = vld [vmem:[%s1854_s4 + $0x78] sm:$0xff]  ;;  %1364 = vmatprep.subr.mxu0 %v418_v2  ;;  %v508_v5 = vld [vmem:[%s1854_s4 + $0x70] sm:$0xff]  ;;  %v507_v15 = vld [vmem:[%s1854_s4 + $0x68] sm:$0xff] }
   0xd   : > { %s354_s18 = scalar_lea.vmem %s1850_s0, %s1288_s15  ;;  %1399 = vmatprep.subr.mxu1 %v509_v3  ;;  %1365 = vmatpush3.msra.mxu0 %v418_v2  ;;  %v415_v16 = vld [vmem:[%s1853_s3 + $0x60] sm:$0xff]  ;;  %v414_v18 = vld [vmem:[%s1853_s3 + $0x58] sm:$0xff]  ;;  %v413_v20 = vld [vmem:[%s1853_s3 + $0x50] sm:$0xff]  ;;  %s359_s19 = scalar_lea.vmem %s1860_s10, %s1288_s15 }
   0xe   : > { %v1611_v0 = vld [vmem:[%s354_s18] sm:$0xff]  ;;  %v1614_v1 = vld [vmem:[%s354_s18 + $0x8] sm:$0xff]  ;;  %1400 = vmatpush3.msra.mxu1 %v509_v3  ;;  %1366 = vmatprep.subr.mxu0 %v417_v4  ;;  %v505_v19 = vld [vmem:[%s1854_s4 + $0x58] sm:$0xff] }
   0xf   : > { %364 = vadd.xlane.f32.xlu0 %v1611_v0  ;;  %1401 = vmatprep.subr.mxu1 %v508_v5  ;;  %v506_v17 = vld [vmem:[%s1854_s4 + $0x60] sm:$0xff]  ;;  %v504_v21 = vld [vmem:[%s1854_s4 + $0x50] sm:$0xff]  ;;  %v412_v22 = vld [vmem:[%s1853_s3 + $0x48] sm:$0xff] }
  0x10   : > { %1367 = vmatpush3.msra.mxu0 %v417_v4  ;;  %1402 = vmatpush3.msra.mxu1 %v508_v5  ;;  %v503_v23 = vld [vmem:[%s1854_s4 + $0x48] sm:$0xff]  ;;  %v411_v24 = vld [vmem:[%s1853_s3 + $0x40] sm:$0xff]  ;;  %v410_v26 = vld [vmem:[%s1853_s3 + $0x38] sm:$0xff] }
  0x11   : > { %1368 = vmatprep.subr.mxu0 %v416_v14  ;;  %1403 = vmatprep.subr.mxu1 %v507_v15  ;;  %v502_v25 = vld [vmem:[%s1854_s4 + $0x40] sm:$0xff]  ;;  %v501_v27 = vld [vmem:[%s1854_s4 + $0x38] sm:$0xff]  ;;  %v409_v28 = vld [vmem:[%s1853_s3 + $0x30] sm:$0xff] }
  0x12   : > { %1369 = vmatpush3.msra.mxu0 %v416_v14  ;;  %1404 = vmatpush3.msra.mxu1 %v507_v15  ;;  %v500_v29 = vld [vmem:[%s1854_s4 + $0x30] sm:$0xff]  ;;  %v408_v30 = vld [vmem:[%s1853_s3 + $0x28] sm:$0xff]  ;;  %v407_v32 = vld [vmem:[%s1853_s3 + $0x20] sm:$0xff] }
  0x13   : > { %366 = vadd.xlane.f32.xlu0 %v1614_v1  ;;  %1370 = vmatprep.subr.mxu0 %v415_v16  ;;  %v499_v31 = vld [vmem:[%s1854_s4 + $0x28] sm:$0xff]  ;;  %v498_v33 = vld [vmem:[%s1854_s4 + $0x20] sm:$0xff]  ;;  %v406_v34 = vld [vmem:[%s1853_s3 + $0x18] sm:$0xff] }
  0x14   : > { %1405 = vmatprep.subr.mxu1 %v506_v17  ;;  %1371 = vmatpush3.msra.mxu0 %v415_v16  ;;  %v497_v35 = vld [vmem:[%s1854_s4 + $0x18] sm:$0xff]  ;;  %v405_v36 = vld [vmem:[%s1853_s3 + $0x10] sm:$0xff]  ;;  %v404_v38 = vld [vmem:[%s1853_s3 + $0x8] sm:$0xff] }
  0x15   : > { %1406 = vmatpush3.msra.mxu1 %v506_v17  ;;  %1372 = vmatprep.subr.mxu0 %v414_v18  ;;  %v496_v37 = vld [vmem:[%s1854_s4 + $0x10] sm:$0xff]  ;;  %v495_v39 = vld [vmem:[%s1854_s4 + $0x8] sm:$0xff]  ;;  %v403_v40 = vld [vmem:[%s1853_s3] sm:$0xff] }
  0x16   : > { %1407 = vmatprep.subr.mxu1 %v505_v19  ;;  %1373 = vmatpush3.msra.mxu0 %v414_v18  ;;  %v494_v41 = vld [vmem:[%s1854_s4] sm:$0xff]  ;;  %v1268_v15 = vld [vmem:[%s1855_s5 + $0x28] sm:$0xff]  ;;  %v1272_v16 = vld [vmem:[%s1855_s5 + $0x30] sm:$0xff] }
  0x17   : > { %1408 = vmatpush3.msra.mxu1 %v505_v19  ;;  %1374 = vmatprep.subr.mxu0 %v413_v20  ;;  %v1255_v49 = vld [vmem:[%s1851_s1] ss:$0 sm:$0xff]  ;;  %v1273_v17 = vld [vmem:[%s1855_s5 + $0x38] sm:$0xff]  ;;  %v1278_v19 = vld [vmem:[%s1855_s5 + $0x48] sm:$0xff] }
  0x18   : > { %1409 = vmatprep.subr.mxu1 %v504_v21  ;;  %1375 = vmatpush3.msra.mxu0 %v413_v20  ;;  %v1256_v51 = vld [vmem:[%s1852_s2] ss:$0 sm:$0xff]  ;;  %v1111_v20 = vld [vmem:[%s1859_s9 + $0x78] sm:$0xff] }
  0x19   : > { %1410 = vmatpush3.msra.mxu1 %v504_v21  ;;  %1376 = vmatprep.subr.mxu0 %v412_v22  ;;  %v599_v58 = vld [vmem:[%s1855_s5] sm:$0xff]  ;;  %v1110_v21 = vld [vmem:[%s1859_s9 + $0x70] sm:$0xff] }
  0x1a   : > { %1411 = vmatprep.subr.mxu1 %v503_v23  ;;  %1377 = vmatpush3.msra.mxu0 %v412_v22  ;;  %v1267_v14 = vld [vmem:[%s1855_s5 + $0x20] sm:$0xff]  ;;  %v1109_v22 = vld [vmem:[%s1859_s9 + $0x68] sm:$0xff] }
  0x1b   : > { %1412 = vmatpush3.msra.mxu1 %v503_v23  ;;  %1378 = vmatprep.subr.mxu0 %v411_v24  ;;  %v1277_v18 = vld [vmem:[%s1855_s5 + $0x40] sm:$0xff] }
  0x1c   : > { %1413 = vmatprep.subr.mxu1 %v502_v25  ;;  %1379 = vmatpush3.msra.mxu0 %v411_v24  ;;  %v1108_v23 = vld [vmem:[%s1859_s9 + $0x60] sm:$0xff]  ;;  %v1107_v24 = vld [vmem:[%s1859_s9 + $0x58] sm:$0xff] }
  0x1d   : > { %1414 = vmatpush3.msra.mxu1 %v502_v25  ;;  %1380 = vmatprep.subr.mxu0 %v410_v26  ;;  %v1106_v25 = vld [vmem:[%s1859_s9 + $0x50] sm:$0xff] }
  0x1e   : > { %1415 = vmatprep.subr.mxu1 %v501_v27  ;;  %1381 = vmatpush3.msra.mxu0 %v410_v26  ;;  %v1105_v26 = vld [vmem:[%s1859_s9 + $0x48] sm:$0xff] }
  0x1f   : > { %1416 = vmatpush3.msra.mxu1 %v501_v27  ;;  %1382 = vmatprep.subr.mxu0 %v409_v28  ;;  %v1104_v27 = vld [vmem:[%s1859_s9 + $0x40] sm:$0xff] }
  0x20   : > { %1417 = vmatprep.subr.mxu1 %v500_v29  ;;  %1383 = vmatpush3.msra.mxu0 %v409_v28  ;;  %v1103_v28 = vld [vmem:[%s1859_s9 + $0x38] sm:$0xff] }
  0x21   : > { %1418 = vmatpush3.msra.mxu1 %v500_v29  ;;  %1384 = vmatprep.subr.mxu0 %v408_v30  ;;  %v1102_v29 = vld [vmem:[%s1859_s9 + $0x30] sm:$0xff] }
  0x22   : > { %1419 = vmatprep.subr.mxu1 %v499_v31  ;;  %1385 = vmatpush3.msra.mxu0 %v408_v30  ;;  %v1101_v30 = vld [vmem:[%s1859_s9 + $0x28] sm:$0xff] }
  0x23   : > { %1420 = vmatpush3.msra.mxu1 %v499_v31  ;;  %1386 = vmatprep.subr.mxu0 %v407_v32  ;;  %v1100_v31 = vld [vmem:[%s1859_s9 + $0x20] sm:$0xff] }
  0x24   : > { %1421 = vmatprep.subr.mxu1 %v498_v33  ;;  %1387 = vmatpush3.msra.mxu0 %v407_v32  ;;  %v1099_v32 = vld [vmem:[%s1859_s9 + $0x18] sm:$0xff] }
  0x25   : > { %1422 = vmatpush3.msra.mxu1 %v498_v33  ;;  %1388 = vmatprep.subr.mxu0 %v406_v34  ;;  %v1098_v33 = vld [vmem:[%s1859_s9 + $0x10] sm:$0xff] }
  0x26   : > { %1423 = vmatprep.subr.mxu1 %v497_v35  ;;  %1389 = vmatpush3.msra.mxu0 %v406_v34  ;;  %v1097_v34 = vld [vmem:[%s1859_s9 + $0x8] sm:$0xff] }
  0x27   : > { %1424 = vmatpush3.msra.mxu1 %v497_v35  ;;  %1390 = vmatprep.subr.mxu0 %v405_v36  ;;  %v1096_v35 = vld [vmem:[%s1859_s9] sm:$0xff] }
  0x28   : > { %1425 = vmatprep.subr.mxu1 %v496_v37  ;;  %1391 = vmatpush3.msra.mxu0 %v405_v36 }
  0x29   : > { %1426 = vmatpush3.msra.mxu1 %v496_v37  ;;  %1392 = vmatprep.subr.mxu0 %v404_v38 }
  0x2a   : > { %1427 = vmatprep.subr.mxu1 %v495_v39  ;;  %1393 = vmatpush3.msra.mxu0 %v404_v38 }
  0x2b   : > { %1428 = vmatpush3.msra.mxu1 %v495_v39  ;;  %1394 = vmatprep.subr.mxu0 %v403_v40  ;;  %v1266_v39 = vld [vmem:[%s1856_s6 + $0x1] ss:$0 sm:$0xff] }
  0x2c   : > { %1429 = vmatprep.subr.mxu1 %v494_v41  ;;  %1395 = vmatpush3.msra.mxu0 %v403_v40 }
  0x2d   : > { %1430 = vmatpush3.msra.mxu1 %v494_v41  ;;  %v1261_v41 = vld [vmem:[%s1856_s6] ss:$0 sm:$0xff] }
  0x2e   : > { %1469 = vmatprep.subr.mxu1 %v1111_v20 }
  0x98   : > { %v365_v6 = vpop.xlane.xlu0 %364 }
  0x99   : > { %v369_v7 = vmul.f32 0.0078125, %v365_v6 }
  0x9b   : > { %v1630_v8 = vsub.f32 %v1611_v0, %v369_v7 }
  0x9c   : > { %v367_v9 = vpop.xlane.xlu0 %366 }
  0x9d   : > { %v370_v10 = vmul.f32 0.0078125, %v367_v9  ;;  %v373_v11 = vmul.f32 %v1630_v8, %v1630_v8 }
  0x9f   : > { %v1635_v12 = vsub.f32 %v1614_v1, %v370_v10  ;;  %375 = vadd.xlane.f32.xlu1 %v373_v11  ;;  %v600_v11 = vld [vmem:[%s1855_s5 + $0x8] sm:$0xff] }
  0xa1   : > { %v374_v13 = vmul.f32 %v1635_v12, %v1635_v12 }
  0xa3   : > { %377 = vadd.xlane.f32.xlu1 %v374_v13  ;;  %v1263_v13 = vld [vmem:[%s1855_s5 + $0x18] sm:$0xff] }
 0x128   : > { %v376_v42 = vpop.xlane.xlu1 %375 }
 0x129   : > { %v379_v43 = vmul.f32 0.0078125, %v376_v42 }
 0x12b   : > { %v381_v44 = vadd.f32 1e-05, %v379_v43  ;;  %v1271_v43 = vld [vmem:[%s1856_s6 + $0x2] ss:$0 sm:$0xff] }
 0x12c   : > { %v378_v45 = vpop.xlane.xlu1 %377 }
 0x12d   : > { %1512 = vrsqrt.f32 %v381_v44  ;;  %v380_v46 = vmul.f32 0.0078125, %v378_v45 }
 0x12f   : > { %v382_v47 = vadd.f32 1e-05, %v380_v46  ;;  %v1276_v46 = vld [vmem:[%s1856_s6 + $0x3] ss:$0 sm:$0xff] }
 0x131   : > { %1514 = vrsqrt.f32 %v382_v47 }
 0x13a   : > { %v1513_v48 = vpop.eup %1512 }
 0x13b   : > { %v385_v50 = vmul.f32 %v1513_v48, %v1630_v8 }
 0x13d   : > { %v393_v52 = vmul.f32 %v1255_v49, %v385_v50 }
 0x13e   : > { %v1515_v53 = vpop.eup %1514 }
 0x13f   : > { %v386_v54 = vmul.f32 %v1515_v53, %v1635_v12  ;;  %v401_v55 = vadd.f32 %v1256_v51, %v393_v52  ;;  %v1262_v12 = vld [vmem:[%s1855_s5 + $0x10] sm:$0xff] }
 0x141   : > { %v394_v56 = vmul.f32 %v1255_v49, %v386_v54  ;;  %1396 = vmatprep.mubr.f32.mxu0 %v401_v55  ;;  %1431 = vmatprep.mubr.f32.mxu1 %v401_v55 }
 0x143   : > { %v402_v57 = vadd.f32 %v1256_v51, %v394_v56  ;;  %v1281_v56 = vld [vmem:[%s1856_s6 + $0x4] ss:$0 sm:$0xff] }
 0x145   : > { %1397 = vmatmul.mubr.f32.vlgmr.msra.gmra.mxu0 %v402_v57  ;;  %1432 = vmatmul.mubr.f32.vlgmr.msra.gmra.mxu1 %v402_v57 }
 0x146   : > { %1438 = vmatprep.mubr.msk.f32.mxu0 %vm601_vm0, %v599_v58  ;;  %1470 = vmatpush3.msra.mxu1 %v1111_v20 }
 0x147   : > { %1471 = vmatprep.subr.mxu1 %v1110_v21 }
 0x148   : > { %1472 = vmatpush3.msra.mxu1 %v1110_v21 }
 0x149   : > { %1473 = vmatprep.subr.mxu1 %v1109_v22 }
 0x14a   : > { %1474 = vmatpush3.msra.mxu1 %v1109_v22 }
 0x14b   : > { %1475 = vmatprep.subr.mxu1 %v1108_v23 }
 0x14c   : > { %1476 = vmatpush3.msra.mxu1 %v1108_v23 }
 0x14d   : > { %1477 = vmatprep.subr.mxu1 %v1107_v24 }
 0x14e   : > { %1478 = vmatpush3.msra.mxu1 %v1107_v24 }
 0x14f   : > { %1479 = vmatprep.subr.mxu1 %v1106_v25 }
 0x150   : > { %1480 = vmatpush3.msra.mxu1 %v1106_v25 }
 0x151   : > { %1481 = vmatprep.subr.mxu1 %v1105_v26 }
 0x152   : > { %1482 = vmatpush3.msra.mxu1 %v1105_v26 }
 0x153   : > { %1483 = vmatprep.subr.mxu1 %v1104_v27 }
 0x154   : > { %1484 = vmatpush3.msra.mxu1 %v1104_v27 }
 0x155   : > { %1485 = vmatprep.subr.mxu1 %v1103_v28 }
 0x156   : > { %1486 = vmatpush3.msra.mxu1 %v1103_v28 }
 0x157   : > { %1487 = vmatprep.subr.mxu1 %v1102_v29 }
 0x158   : > { %1488 = vmatpush3.msra.mxu1 %v1102_v29 }
 0x159   : > { %1489 = vmatprep.subr.mxu1 %v1101_v30 }
 0x15a   : > { %1490 = vmatpush3.msra.mxu1 %v1101_v30 }
 0x15b   : > { %1491 = vmatprep.subr.mxu1 %v1100_v31 }
 0x15c   : > { %1492 = vmatpush3.msra.mxu1 %v1100_v31 }
 0x15d   : > { %1493 = vmatprep.subr.mxu1 %v1099_v32 }
 0x15e   : > { %1494 = vmatpush3.msra.mxu1 %v1099_v32 }
 0x15f   : > { %1495 = vmatprep.subr.mxu1 %v1098_v33 }
 0x160   : > { %1496 = vmatpush3.msra.mxu1 %v1098_v33 }
 0x161   : > { %1497 = vmatprep.subr.mxu1 %v1097_v34 }
 0x162   : > { %1498 = vmatpush3.msra.mxu1 %v1097_v34 }
 0x163   : > { %1499 = vmatprep.subr.mxu1 %v1096_v35 }
 0x164   : > { %1500 = vmatpush3.msra.mxu1 %v1096_v35 }
 0x205   : > { %v1433_v59 = vpop.f32.mrf.mxu1  ;;  %v1398_v5 = vpop.f32.mrf.mxu0 }
 0x206   : > { %v1258_v60 = vmul.f32 -1.442695, %v1433_v59 }
 0x207   : > { %v576_v61 = vpop.f32.mrf.mxu1  ;;  %v485_v9 = vpop.f32.mrf.mxu0 }
 0x208   : > { %1516 = vpow2.f32 %v1258_v60  ;;  %v1257_v62 = vmul.f32 -1.442695, %v576_v61 }
 0x20a   : > { %1518 = vpow2.f32 %v1257_v62 }
 0x215   : > { %v1517_v63 = vpop.eup %1516 }
 0x216   : > { %v592_v2 = vadd.f32 1.0, %v1517_v63 }
 0x217   : > { %v1519_v3 = vpop.eup %1518 }
 0x218   : > { %1520 = vrcp.f32 %v592_v2  ;;  %v591_v4 = vadd.f32 1.0, %v1519_v3  ;;  %v1282_v2 = vld [vmem:[%s1857_s7] ss:$0 sm:$0xff] }
 0x21a   : > { %1522 = vrcp.f32 %v591_v4 }
 0x225   : > { %v1521_v6 = vpop.eup %1520 }
 0x226   : > { %v598_v7 = vmul.f32 %v1521_v6, %v1398_v5 }
 0x227   : > { %v1523_v8 = vpop.eup %1522 }
 0x228   : > { %v597_v10 = vmul.f32 %v1523_v8, %v485_v9  ;;  %1434 = vmatprep.subr.mxu0 %v598_v7 }
 0x229   : > { %1435 = vmatpush3.msra.mxu0 %v598_v7 }
 0x22a   : > { %1436 = vmatprep.subr.mxu0 %v597_v10 }
 0x22b   : > { %1437 = vmatpush3.msra.mxu0 %v597_v10 }
 0x22c   : > { %1439 = vmatmul.mubr.msk.f32.vlgmr.msra.gmra.mxu0 %vm601_vm0, %v600_v11  ;;  %1441 = vmatprep.subr.mxu0 %v598_v7 }
 0x22d   : > { %1442 = vmatpush3.msra.mxu0 %v598_v7  ;;  %1445 = vmatprep.mubr.msk.f32.mxu0 %vm601_vm0, %v1262_v12 }
 0x22e   : > { %1443 = vmatprep.subr.mxu0 %v597_v10 }
 0x22f   : > { %1444 = vmatpush3.msra.mxu0 %v597_v10 }
 0x230   : > { %1446 = vmatmul.mubr.msk.f32.vlgmr.msra.gmra.mxu0 %vm601_vm0, %v1263_v13  ;;  %1448 = vmatprep.subr.mxu0 %v598_v7 }
 0x231   : > { %1449 = vmatpush3.msra.mxu0 %v598_v7  ;;  %1452 = vmatprep.mubr.msk.f32.mxu0 %vm601_vm0, %v1267_v14 }
 0x232   : > { %1450 = vmatprep.subr.mxu0 %v597_v10 }
 0x233   : > { %1451 = vmatpush3.msra.mxu0 %v597_v10 }
 0x234   : > { %1453 = vmatmul.mubr.msk.f32.vlgmr.msra.gmra.mxu0 %vm601_vm0, %v1268_v15  ;;  %1455 = vmatprep.subr.mxu0 %v598_v7 }
 0x235   : > { %1456 = vmatpush3.msra.mxu0 %v598_v7  ;;  %1459 = vmatprep.mubr.msk.f32.mxu0 %vm601_vm0, %v1272_v16 }
 0x236   : > { %1457 = vmatprep.subr.mxu0 %v597_v10 }
 0x237   : > { %1458 = vmatpush3.msra.mxu0 %v597_v10 }
 0x238   : > { %1460 = vmatmul.mubr.msk.f32.vlgmr.msra.gmra.mxu0 %vm601_vm0, %v1273_v17  ;;  %1462 = vmatprep.subr.mxu0 %v598_v7 }
 0x239   : > { %1463 = vmatpush3.msra.mxu0 %v598_v7  ;;  %1466 = vmatprep.mubr.msk.f32.mxu0 %vm601_vm0, %v1277_v18  ;;  %v1283_v7 = vld [vmem:[%s1858_s8] ss:$0 sm:$0xff] }
 0x23a   : > { %1464 = vmatprep.subr.mxu0 %v597_v10 }
 0x23b   : > { %1465 = vmatpush3.msra.mxu0 %v597_v10 }
 0x23c   : > { %1467 = vmatmul.mubr.msk.f32.vlgmr.msra.gmra.mxu0 %vm601_vm0, %v1278_v19 }
 0x2ec   : > { %v1440_v36 = vpop.f32.mrf.mxu0 }
 0x2ed   : > { %v689_v47 = vmul.f32 %v1440_v36, %v1261_v41 }
 0x2ee   : > { %v674_v37 = vpop.f32.mrf.mxu0 }
 0x2ef   : > { %v688_v51 = vmul.f32 %v1261_v41, %v674_v37 }
 0x2f0   : > { %v1447_v38 = vpop.f32.mrf.mxu0 }
 0x2f1   : > { %v782_v44 = vmul.f32 %v1447_v38, %v1266_v39 }
 0x2f2   : > { %v767_v40 = vpop.f32.mrf.mxu0 }
 0x2f3   : > { %v781_v48 = vmul.f32 %v1266_v39, %v767_v40  ;;  %v784_v52 = vadd.f32 %v782_v44, %v689_v47 }
 0x2f4   : > { %v1454_v42 = vpop.f32.mrf.mxu0 }
 0x2f5   : > { %v875_v49 = vmul.f32 %v1454_v42, %v1271_v43  ;;  %v783_v57 = vadd.f32 %v781_v48, %v688_v51 }
 0x2f6   : > { %v860_v45 = vpop.f32.mrf.mxu0 }
 0x2f7   : > { %v874_v53 = vmul.f32 %v1271_v43, %v860_v45  ;;  %v877_v58 = vadd.f32 %v875_v49, %v784_v52 }
 0x2f8   : > { %v1461_v50 = vpop.f32.mrf.mxu0 }
 0x2f9   : > { %v968_v54 = vmul.f32 %v1461_v50, %v1276_v46  ;;  %v876_v61 = vadd.f32 %v874_v53, %v783_v57 }
 0x2fa   : > { %v953_v55 = vpop.f32.mrf.mxu0 }
 0x2fb   : > { %v967_v59 = vmul.f32 %v1276_v46, %v953_v55  ;;  %v970_v62 = vadd.f32 %v968_v54, %v877_v58 }
 0x2fc   : > { %v1468_v60 = vpop.f32.mrf.mxu0 }
 0x2fd   : > { %v1061_v63 = vmul.f32 %v1468_v60, %v1281_v56  ;;  %v969_v4 = vadd.f32 %v967_v59, %v876_v61 }
 0x2fe   : > { %v1046_v3 = vpop.f32.mrf.mxu0 }
 0x2ff   : > { %v1063_v5 = vadd.f32 %v1061_v63, %v970_v62  ;;  %v1060_v6 = vmul.f32 %v1281_v56, %v1046_v3 }
 0x301   : > { %v1072_v8 = vmul.f32 %v1282_v2, %v1063_v5  ;;  %v1062_v9 = vadd.f32 %v1060_v6, %v969_v4 }
 0x303   : > { %v1081_v10 = vadd.f32 %v1283_v7, %v1072_v8  ;;  %v1071_v11 = vmul.f32 %v1282_v2, %v1062_v9 }
 0x305   : > { %v1285_v12 = vmul.f32 -1.442695, %v1081_v10  ;;  %v1080_v13 = vadd.f32 %v1283_v7, %v1071_v11 }
 0x307   : > { %1524 = vpow2.f32 %v1285_v12  ;;  %v1284_v14 = vmul.f32 -1.442695, %v1080_v13 }
 0x309   : > { %1526 = vpow2.f32 %v1284_v14 }
 0x314   : > { %v1525_v15 = vpop.eup %1524 }
 0x315   : > { %v1089_v16 = vadd.f32 1.0, %v1525_v15 }
 0x316   : > { %v1527_v17 = vpop.eup %1526 }
 0x317   : > { %v1088_v18 = vadd.f32 1.0, %v1527_v17  ;;  %1528 = vrcp.f32 %v1089_v16 }
 0x319   : > { %1530 = vrcp.f32 %v1088_v18 }
 0x324   : > { %v1529_v19 = vpop.eup %1528 }
 0x325   : > { %v1095_v22 = vmul.f32 %v1529_v19, %v1081_v10 }
 0x326   : > { %v1531_v20 = vpop.eup %1530 }
 0x327   : > { %v1094_v21 = vmul.f32 %v1531_v20, %v1080_v13 }
 0x329   : > { %1501 = vmatprep.mubr.f32.mxu1 %v1094_v21 }
 0x32a   : > { %1502 = vmatmul.mubr.f32.vlgmr.msra.gmra.mxu1 %v1095_v22 }
 0x3ea   : > { %v1503_v23 = vpop.f32.mrf.mxu1 }
 0x3eb   : > { %v1188_v24 = vadd.f32 %v1503_v23, %v1614_v1 }
 0x3ec   : > { %v1178_v25 = vpop.f32.mrf.mxu1 }
 0x3ed   : > { %1190 = vst [vmem:[%s359_s19 + $0x8] sm:$0xff] %v1188_v24  ;;  %v1187_v26 = vadd.f32 %v1178_v25, %v1611_v0 }
 0x3ef   : > { %1189 = vst [vmem:[%s359_s19] sm:$0xff] %v1187_v26 }
 0x3f0 PF: > { %s20_s13 = sadd.s32 1, %s1538_s13  }
 0x3f1   : > { %p17_p4 = scmp.ge.s32.totalorder %s20_s13, 4  }
 0x3f3   :  { %19 = sbr.rel (!%p17_p4) target bundleno = 1 (0x1), region = 94 }

</bundles_post_ra>
